<compile_context>
chip_gen: v7x
topology: tpu7x:2x2x1
jax: 0.10.0
libtpu: 0.0.40
codegen_flags: <defaults>
</compile_context>

<pallas_src>
import functools

import jax
import jax.numpy as jnp
from jax.experimental import pallas as pl
from jax.experimental.pallas import tpu as pltpu


# ---------------------------------------------------------------------------
# Device-aware VMEM budget (v7x has only 64 MiB physical per TensorCore).
# ---------------------------------------------------------------------------
def _vmem_limit_bytes():
    try:
        cap = int(pltpu.get_tpu_info().vmem_capacity_bytes)
    except Exception:
        cap = 64 * 1024 * 1024
    return max(32 * 1024 * 1024, min(cap * 3 // 4, 100 * 1024 * 1024))


_VMEM_LIMIT = _vmem_limit_bytes()


def _largest_div(n, mult, cap):
    """Largest divisor of n that is a multiple of `mult` and <= cap; falls
    back to n itself (full-dim blocks are always legal)."""
    best = None
    d = mult
    top = min(n, cap)
    while d <= top:
        if n % d == 0:
            best = d
        d += mult
    return best if best is not None else n


# ---------------------------------------------------------------------------
# Fused 3x3 stride-1 pad-1 conv + bias + ReLU (+ optional fused 2x2 max-pool).
# The padded input is passed twice: spec A delivers the TR-row body of the
# tile, spec B delivers the 2-row bottom halo.  The 9 taps are accumulated
# in-kernel in f32; no im2col array ever touches HBM.
# ---------------------------------------------------------------------------
def _conv3x3_kernel(xa_ref, xb_ref, w_ref, b_ref, o_ref, *, tr, width, pool):
    cin = xa_ref.shape[-1]
    tco = o_ref.shape[-1]
    acc = None
    for dx in range(3):
        # Column shift handled by a static window on the refs; flatten rows so
        # the dy shift becomes a contiguous row offset of the 2-D matrix.
        xs = jnp.concatenate(
            [xa_ref[0, :, dx:dx + width, :], xb_ref[0, :, dx:dx + width, :]],
            axis=0).reshape((tr + 2) * width, cin)
        for dy in range(3):
            patch = xs[dy * width:(dy + tr) * width, :]
            contrib = jnp.dot(patch, w_ref[dy, dx],
                              preferred_element_type=jnp.float32)
            acc = contrib if acc is None else acc + contrib
    acc = jnp.maximum(acc + b_ref[...], 0.0)  # bias + ReLU in f32
    if pool:
        # Fused 2x2/2 max-pool over the (tr, width) tile (tr, width even).
        r = acc.reshape(tr * width // 2, 2, tco)
        r = jnp.maximum(r[:, 0, :], r[:, 1, :])            # pool along W
        r = r.reshape(tr // 2, 2, width // 2, tco)
        r = jnp.maximum(r[:, 0, :, :], r[:, 1, :, :])      # pool along H
        o_ref[...] = r[None].astype(o_ref.dtype)
    else:
        o_ref[...] = acc.reshape(1, tr, width, tco).astype(o_ref.dtype)


def _conv_tiles(n, h, w, cin, cout):
    """Row tile (even, divides H) and Cout tile; guarantees >=2 grid programs
    so both v7x TensorCores get work, while keeping tiles VMEM-friendly."""
    tco = cout if cout <= 256 else 256
    budget = 6272 if max(cin, cout) <= 64 else 3136   # rows*W per step
    divs = [d for d in range(2, h + 1, 2) if h % d == 0] or [h]
    fitting = [d for d in divs if d * w <= budget]
    tr = max(fitting) if fitting else divs[0]
    while n * (h // tr) * (cout // tco) < 2:
        smaller = [d for d in divs if d < tr]
        if not smaller:
            break
        tr = max(smaller)
    return tr, tco


def conv3x3_relu(x, w_hwio, bias, pool):
    """x: (N,H,W,Cin) bf16; w: (3,3,Cin,Cout) bf16; bias: (Cout,) f32."""
    n, h, w, cin = x.shape
    cout = w_hwio.shape[-1]
    assert h % 2 == 0 and w % 2 == 0
    tr, tco = _conv_tiles(n, h, w, cin, cout)
    ho, wo = (h // 2, w // 2) if pool else (h, w)
    to_r = tr // 2 if pool else tr
    nj, ni = cout // tco, h // tr

    xp = jnp.pad(x, ((0, 0), (1, 1), (1, 1), (0, 0)))
    kernel = functools.partial(_conv3x3_kernel, tr=tr, width=w, pool=pool)
    half = tr // 2  # halo block index step (in 2-row units)

    out = pl.pallas_call(
        kernel,
        out_shape=jax.ShapeDtypeStruct((n, ho, wo, cout), jnp.bfloat16),
        grid_spec=pltpu.PrefetchScalarGridSpec(
            num_scalar_prefetch=0,
            grid=(n, nj, ni),
            in_specs=[
                # body rows [i*tr, (i+1)*tr) of the padded input
                pl.BlockSpec((1, tr, w + 2, cin),
                             lambda b_, j, i: (b_, i, 0, 0)),
                # 2-row bottom halo [ (i+1)*tr, (i+1)*tr + 2 )
                pl.BlockSpec((1, 2, w + 2, cin),
                             lambda b_, j, i: (b_, (i + 1) * half, 0, 0)),
                pl.BlockSpec((3, 3, cin, tco),
                             lambda b_, j, i: (0, 0, 0, j)),
                pl.BlockSpec((1, tco), lambda b_, j, i: (0, j)),
            ],
            out_specs=pl.BlockSpec((1, to_r, wo, tco),
                                   lambda b_, j, i: (b_, i, 0, j)),
        ),
        compiler_params=pltpu.CompilerParams(
            dimension_semantics=("parallel", "parallel", "parallel"),
            vmem_limit_bytes=_VMEM_LIMIT,
        ),
    )(xp, xp, w_hwio, bias.reshape(1, cout))
    return out


# ---------------------------------------------------------------------------
# Fused matmul + bias + optional ReLU (bf16 MXU, f32 accumulate) for the fc
# layers.  When the K grid has a single step, the accumulator scratch is
# skipped and the result is written directly.
# ---------------------------------------------------------------------------
def _fc_kernel_acc(a_ref, b_ref, bias_ref, o_ref, acc_ref, *, relu):
    k = pl.program_id(2)

    @pl.when(k == 0)
    def _():
        acc_ref[...] = jnp.zeros_like(acc_ref)

    acc_ref[...] += jnp.dot(a_ref[...], b_ref[...],
                            preferred_element_type=jnp.float32)

    @pl.when(k == pl.num_programs(2) - 1)
    def _():
        r = acc_ref[...] + bias_ref[...]
        if relu:
            r = jnp.maximum(r, 0.0)
        o_ref[...] = r.astype(o_ref.dtype)


def _fc_kernel_noacc(a_ref, b_ref, bias_ref, o_ref, *, relu):
    r = jnp.dot(a_ref[...], b_ref[...],
                preferred_element_type=jnp.float32) + bias_ref[...]
    if relu:
        r = jnp.maximum(r, 0.0)
    o_ref[...] = r.astype(o_ref.dtype)


def matmul_bias_act(a, b, bias, relu, out_dtype=jnp.bfloat16):
    """(M,K)@(K,N) + bias[N], optional ReLU.  a, b bf16; bias f32."""
    m, k = a.shape
    k2, n = b.shape
    assert k == k2
    tm = m if m <= 256 else _largest_div(m, 8, 256)
    tn = _largest_div(n, 128, 2048)
    cap_k = min(2048, max(128, (8 * 1024 * 1024) // (2 * tn)))
    tk = _largest_div(k, 128, cap_k)
    gi, gj, gk = m // tm, n // tn, k // tk

    if gk == 1:
        kernel = functools.partial(_fc_kernel_noacc, relu=relu)
        scratch = []
    else:
        kernel = functools.partial(_fc_kernel_acc, relu=relu)
        scratch = [pltpu.VMEM((tm, tn), jnp.float32)]

    return pl.pallas_call(
        kernel,
        out_shape=jax.ShapeDtypeStruct((m, n), out_dtype),
        grid_spec=pltpu.PrefetchScalarGridSpec(
            num_scalar_prefetch=0,
            grid=(gi, gj, gk),
            in_specs=[
                pl.BlockSpec((tm, tk), lambda i, j, kk: (i, kk)),
                pl.BlockSpec((tk, tn), lambda i, j, kk: (kk, j)),
                pl.BlockSpec((1, tn), lambda i, j, kk: (0, j)),
            ],
            out_specs=pl.BlockSpec((tm, tn), lambda i, j, kk: (i, j)),
            scratch_shapes=scratch,
        ),
        compiler_params=pltpu.CompilerParams(
            dimension_semantics=("parallel", "parallel", "arbitrary"),
            vmem_limit_bytes=_VMEM_LIMIT,
        ),
    )(a, b, bias.reshape(1, n))


# ---------------------------------------------------------------------------
# VGG-Face architecture (same layer shapes as the PyTorch module).
# ---------------------------------------------------------------------------
VGG_CONV_CFG = [
    ("conv1_1", 3, 64, False), ("conv1_2", 64, 64, True),
    ("conv2_1", 64, 128, False), ("conv2_2", 128, 128, True),
    ("conv3_1", 128, 256, False), ("conv3_2", 256, 256, False),
    ("conv3_3", 256, 256, True),
    ("conv4_1", 256, 512, False), ("conv4_2", 512, 512, False),
    ("conv4_3", 512, 512, True),
    ("conv5_1", 512, 512, False), ("conv5_2", 512, 512, False),
    ("conv5_3", 512, 512, True),
]

VGG_FC_CFG = [
    ("fc6", 25088, 4096, True),
    ("fc7", 4096, 4096, True),
    ("fc8", 4096, 2622, False),
]


def init_params(key):
    """Deterministic synthetic weights (He scaling).  Conv weights HWIO
    (= PyTorch OIHW transposed), fc weights (in, out) (= PyTorch transposed).
    Weights bf16 (MXU-native), biases f32."""
    params = {}
    for idx, (name, cin, cout, _) in enumerate(VGG_CONV_CFG):
        k = jax.random.fold_in(key, idx)
        scale = (2.0 / (9 * cin)) ** 0.5
        params[name] = (
            (scale * jax.random.normal(k, (3, 3, cin, cout),
                                       jnp.float32)).astype(jnp.bfloat16),
            jnp.zeros((cout,), jnp.float32),
        )
    for idx, (name, fin, fout, _) in enumerate(VGG_FC_CFG):
        k = jax.random.fold_in(key, 100 + idx)
        scale = (2.0 / fin) ** 0.5
        params[name] = (
            (scale * jax.random.normal(k, (fin, fout),
                                       jnp.float32)).astype(jnp.bfloat16),
            jnp.zeros((fout,), jnp.float32),
        )
    return params


def vgg_face_forward(params, x_nchw):
    """x_nchw: (N, 3, 224, 224) float32, PyTorch NCHW convention."""
    x = jnp.transpose(x_nchw, (0, 2, 3, 1)).astype(jnp.bfloat16)  # NCHW->NHWC
    for name, _, _, pool_after in VGG_CONV_CFG:
        w, b = params[name]
        x = conv3x3_relu(x, w, b, pool_after)
    # Flatten exactly like PyTorch's x31_preflatten.view(N, -1) on NCHW:
    n = x.shape[0]
    x = jnp.transpose(x, (0, 3, 1, 2)).reshape(n, -1)  # (N, 25088) bf16
    for name, _, fout, relu_after in VGG_FC_CFG:
        w, b = params[name]
        if fout % 128 != 0:  # fc8: pad 2622 -> 2688 for lane-dense stores
            pad = (-fout) % 128
            w = jnp.pad(w, ((0, 0), (0, pad)))
            b = jnp.pad(b, ((0, pad),))
        out_dtype = jnp.bfloat16 if relu_after else jnp.float32
        x = matmul_bias_act(x, w, b, relu_after, out_dtype=out_dtype)
        x = x[:, :fout]
        # TODO(synk): dropout6/dropout7 treated as identity (eval-mode
        # semantics); train-mode p=0.5 dropout is not implemented.
    return x


def _rel_err(got, want):
    got = jnp.asarray(got, jnp.float32)
    want = jnp.asarray(want, jnp.float32)
    return float(jnp.max(jnp.abs(got - want)) /
                 (jnp.max(jnp.abs(want)) + 1e-6))


if __name__ == "__main__":
    key = jax.random.PRNGKey(0)
    pkey, xkey = jax.random.split(key)

    # Sanity check 1: fused fc matmul kernel (bf16 MXU, f32 accumulate).
    a = jax.random.normal(jax.random.fold_in(xkey, 1), (8, 4096),
                          jnp.float32).astype(jnp.bfloat16)
    b = jax.random.normal(jax.random.fold_in(xkey, 2), (4096, 256),
                          jnp.float32).astype(jnp.bfloat16)
    bias = jax.random.normal(jax.random.fold_in(xkey, 3), (256,), jnp.float32)
    got = matmul_bias_act(a, b, bias, True, out_dtype=jnp.float32)
    want = jnp.maximum(
        a.astype(jnp.float32) @ b.astype(jnp.float32) + bias[None, :], 0.0)
    assert _rel_err(got, want) < 2e-2, "fc matmul kernel mismatch"

    # Sanity check 2: fused conv3x3 + ReLU + 2x2 max-pool kernel.
    xc = jax.random.normal(jax.random.fold_in(xkey, 4), (1, 16, 16, 32),
                           jnp.float32).astype(jnp.bfloat16)
    wc = (0.1 * jax.random.normal(jax.random.fold_in(xkey, 5),
                                  (3, 3, 32, 128),
                                  jnp.float32)).astype(jnp.bfloat16)
    bc = jax.random.normal(jax.random.fold_in(xkey, 6), (128,), jnp.float32)
    got_c = conv3x3_relu(xc, wc, bc, pool=True)
    ref = jax.lax.conv_general_dilated(
        xc.astype(jnp.float32), wc.astype(jnp.float32), (1, 1), "SAME",
        dimension_numbers=("NHWC", "HWIO", "NHWC"))
    ref = jnp.maximum(ref + bc[None, None, None, :], 0.0)
    ref = ref.reshape(1, 8, 2, 8, 2, 128).max(axis=(2, 4))
    assert _rel_err(got_c, ref) < 3e-2, "conv kernel mismatch"

    # Full VGG-Face forward.  Batch kept at 1; spatial must be 224 so pool5
    # flattens to the 25088 features fc6 requires.
    params = init_params(pkey)
    x0 = jax.random.normal(xkey, (1, 3, 224, 224), jnp.float32)
    out = jax.block_until_ready(vgg_face_forward(params, x0))
    assert out.shape == (1, 2622)
    assert bool(jnp.all(jnp.isfinite(out)))
    print("KERNEL_OK")
</pallas_src>

<mosaic_0001>
module attributes {stable_mosaic.version = 11 : i64} {
  func.func @_fc_kernel_acc(%arg0: i32, %arg1: i32, %arg2: i32, %arg3: memref<8x2048xbf16, #tpu.memory_space<vmem>>, %arg4: memref<2048x256xbf16, #tpu.memory_space<vmem>>, %arg5: memref<1x256xf32, #tpu.memory_space<vmem>>, %arg6: memref<8x256xf32, #tpu.memory_space<vmem>>, %arg7: memref<8x256xf32, #tpu.memory_space<vmem>>) attributes {dimension_semantics = [#tpu.dimension_semantics<parallel>, #tpu.dimension_semantics<parallel>, #tpu.dimension_semantics<arbitrary>], iteration_bounds = array<i64: 1, 1, 2>, scalar_prefetch = 0 : i64, scratch_operands = 1 : i64, tpu.core_type = #tpu.core_type<tc>, window_params = [{transform_indices = @transform_0, window_bounds = array<i64: 8, 2048>}, {transform_indices = @transform_1, window_bounds = array<i64: 2048, 256>}, {transform_indices = @transform_2, window_bounds = array<i64: 1, 256>}, {transform_indices = @transform_3, window_bounds = array<i64: 8, 256>}]} {
    %c0_i32 = arith.constant 0 : i32
    %0 = arith.cmpi eq, %arg2, %c0_i32 : i32
    %1 = arith.extui %0 : i1 to i32
    %c0_i32_0 = arith.constant 0 : i32
    %2 = arith.cmpi ne, %1, %c0_i32_0 : i32
    scf.if %2 {
      %cst_9 = arith.constant 0.000000e+00 : f32
      %12 = vector.broadcast %cst_9 : f32 to vector<8x256xf32>
      %c0_10 = arith.constant 0 : index
      %c0_11 = arith.constant 0 : index
      %13 = vector.load %arg7[%c0_10, %c0_11] : memref<8x256xf32, #tpu.memory_space<vmem>>, vector<8x256xf32>
      tpu.vector_store %arg7[%c0_10, %c0_11], %12 {strides = array<i32>} : memref<8x256xf32, #tpu.memory_space<vmem>>, vector<8x256xf32>,
    } else {
    }
    %c0 = arith.constant 0 : index
    %c0_1 = arith.constant 0 : index
    %3 = vector.load %arg7[%c0, %c0_1] : memref<8x256xf32, #tpu.memory_space<vmem>>, vector<8x256xf32>
    %c0_2 = arith.constant 0 : index
    %c0_3 = arith.constant 0 : index
    %4 = vector.load %arg3[%c0_2, %c0_3] : memref<8x2048xbf16, #tpu.memory_space<vmem>>, vector<8x2048xbf16>
    %c0_4 = arith.constant 0 : index
    %c0_5 = arith.constant 0 : index
    %5 = vector.load %arg4[%c0_4, %c0_5] : memref<2048x256xbf16, #tpu.memory_space<vmem>>, vector<2048x256xbf16>
    %cst = arith.constant dense<0.000000e+00> : vector<8x256xf32>
    %6 = tpu.matmul %4, %5, %cst {dimension_numbers = #tpu.dot_dimension_numbers<[1], [0], [0], [1], [0, 0, 1, 1], [], []>} : vector<8x2048xbf16>, vector<2048x256xbf16>, vector<8x256xf32> -> vector<8x256xf32>
    %7 = arith.addf %3, %6 : vector<8x256xf32>
    %c0_6 = arith.constant 0 : index
    %c0_7 = arith.constant 0 : index
    %8 = vector.load %arg7[%c0_6, %c0_7] : memref<8x256xf32, #tpu.memory_space<vmem>>, vector<8x256xf32>
    tpu.vector_store %arg7[%c0_6, %c0_7], %7 {strides = array<i32>} : memref<8x256xf32, #tpu.memory_space<vmem>>, vector<8x256xf32>,
    %c1_i32 = arith.constant 1 : i32
    %9 = arith.cmpi eq, %arg2, %c1_i32 : i32
    %10 = arith.extui %9 : i1 to i32
    %c0_i32_8 = arith.constant 0 : i32
    %11 = arith.cmpi ne, %10, %c0_i32_8 : i32
    scf.if %11 {
      %c0_9 = arith.constant 0 : index
      %c0_10 = arith.constant 0 : index
      %12 = vector.load %arg7[%c0_9, %c0_10] : memref<8x256xf32, #tpu.memory_space<vmem>>, vector<8x256xf32>
      %c0_11 = arith.constant 0 : index
      %c0_12 = arith.constant 0 : index
      %13 = vector.load %arg5[%c0_11, %c0_12] : memref<1x256xf32, #tpu.memory_space<vmem>>, vector<1x256xf32>
      %14 = vector.broadcast %13 : vector<1x256xf32> to vector<8x256xf32>
      %15 = arith.addf %12, %14 : vector<8x256xf32>
      %cst_13 = arith.constant 0.000000e+00 : f32
      %16 = vector.broadcast %cst_13 : f32 to vector<8x256xf32>
      %17 = arith.maximumf %15, %16 : vector<8x256xf32>
      %c0_14 = arith.constant 0 : index
      %c0_15 = arith.constant 0 : index
      %18 = vector.load %arg6[%c0_14, %c0_15] : memref<8x256xf32, #tpu.memory_space<vmem>>, vector<8x256xf32>
      tpu.vector_store %arg6[%c0_14, %c0_15], %17 {strides = array<i32>} : memref<8x256xf32, #tpu.memory_space<vmem>>, vector<8x256xf32>,
    } else {
    }
    return
  }
  func.func @transform_0(%arg0: i32, %arg1: i32, %arg2: i32) -> (i32, i32) {
    %c0_i32 = arith.constant 0 : i32
    return %arg0, %arg2 : i32, i32
  }
  func.func @transform_1(%arg0: i32, %arg1: i32, %arg2: i32) -> (i32, i32) {
    %c0_i32 = arith.constant 0 : i32
    return %arg2, %arg1 : i32, i32
  }
  func.func @transform_2(%arg0: i32, %arg1: i32, %arg2: i32) -> (i32, i32) {
    %c0_i32 = arith.constant 0 : i32
    %c0_i32_0 = arith.constant 0 : i32
    return %c0_i32, %arg1 : i32, i32
  }
  func.func @transform_3(%arg0: i32, %arg1: i32, %arg2: i32) -> (i32, i32) {
    %c0_i32 = arith.constant 0 : i32
    return %arg0, %arg1 : i32, i32
  }
}

</mosaic_0001>

<bundles_post_ra>
// kernel: tpu_custom_call.1
= control target key start
LH: loop header
LB: loop body
LE: loop exit
PB: predicated region body
PF: predicated region fallthrough
CT: control target
= control target key end

     0   :  { %8 = vsyncpa [#allocation4], 0  ;;  %s3884_s0 = inlined_call_operand.hbm [shape: bf16[8,4096], index: 0, kind: input, shape index: {}]   ;;  %s3885_s1 = inlined_call_operand.hbm [shape: bf16[4096,256], index: 1, kind: input, shape index: {}]   ;;  %s3886_s2 = inlined_call_operand.hbm [shape: f32[1,256], index: 2, kind: input, shape index: {}]   ;;  %s3887_s3 = inlined_call_operand.hbm [shape: f32[8,256], index: 3, kind: output, shape index: {}]  }
   0x1   :  { %10 = vsyncpa [#allocation4 + $0x1], 0 }
   0x2   :  { %11 = vsyncpa [#allocation7], 0 }
   0x3   :  { %13 = vsyncpa [#allocation7 + $0x1], 0 }
   0x4   :  { %14 = vsyncpa [#allocation5], 0  ;;  %s3340_s12 = smov 0   ;;  %s3342_s13 = smov 0  }
   0x5   :  { %s3344_s14 = smov 0   ;;  %s3346_s15 = smov 0  }
   0x6   :  { %s3348_s16 = smov 0   ;;  %s3350_s17 = smov 0  }
   0x7 LB: > { %s3369_s18 = sadd.s32 4294967295, %s3311_s17   ;;  %s48_s19 = sadd.s32 1, %s3299_s14  ;;  %s3311_s17 = sphi %s3350_s17, %s20_s17   ;;  %s3307_s16 = sphi %s3348_s16, %s3908_s16   ;;  %s3303_s15 = sphi %s3346_s15, %s3907_s15   ;;  %s3299_s14 = sphi %s3344_s14, %s3906_s14   ;;  %s3295_s13 = sphi %s3342_s13, %s3905_s13   ;;  %s3291_s12 = sphi %s3340_s12, %s3904_s12  }
   0x8   : > { %p55_p0 = scmp.ne.s32.totalorder %s3299_s14, %s3295_s13  ;;  %p61_p1 = scmp.ne.s32.totalorder %s3295_s13, %s3291_s12 }
   0x9   : > { %p3888_p2 = scmp.eq.s32.totalorder %s3369_s18, 0  ;;  %p2359_p3 = scmp.ge.s32.totalorder %s3311_s17, 1 }
   0xa   : > { %p154_p4 = scmp.lt.s32.totalorder %s3311_s17, 3  ;;  %s3313_s22 = smov [#allocation8]  }
   0xb   : > { %p3380_p5 = por %p3888_p2, %p61_p1  ;;  %s170_s23 = sshll.u32 %s3313_s22, 4  ;;  %s171_s23 = int_to_ptr.vmem [resolvable:$true] %s170_s23 }
   0xc   : > { %p3384_p6 = pnand %p2359_p3, %p154_p4  ;;  %p56_p8 = scmp.eq.s32.totalorder %s3311_s17, 0 }
   0xd   : > { %s3891_s20 = scalar_select %p3380_p5, 1, 0 }
   0xe   : > { %s3892_s21 = scalar_select %p3384_p6, 1, 0 }
   0xf   : > { %p2666_p7 = pneg %p3384_p6  ;;  %s32_s25 = sadd.s32 1, %s3307_s16 }
  0x10   : > { %p3398_p10 = scmp.ge.s32.totalorder %s32_s25, 2  ;;  %p3405_p11 = por %p56_p8, %p55_p0 }
  0x11   : > { %p3393_p9 = pnand %p2666_p7, %p3888_p2  ;;  %s3135_s30 = scalar_lea.hbm %s3886_s2, 32 }
  0x12   : > { %s3894_s26 = scalar_select %p3398_p10, 1, 0 }
  0x13   : > { %s3895_s27 = scalar_select %p3405_p11, 1, 0 }
  0x14   : > { %p3136_p13 = scmp.ne.s32.totalorder %s3886_s2, %s3135_s30  ;;  %p3137_p1 = pneg %p3393_p9 }
  0x15   : > { %p3142_p0 = scmp.lt.u32.totalorder %s3135_s30, %s3886_s2 }
  0x16   : > { %p3138_p3 = pnand %p3137_p1, %p3136_p13 }
  0x18   : > { %p3139_p4 = pneg %p3138_p3 }
  0x1a   : > { %p3144_p7 = pnand %p3142_p0, %p3139_p4 }
  0x1c   : > { %3147 = shalt.err (!%p3144_p7)
}
  0x1d   : > { %s3148_s8 = scalar_lea.vmem %s171_s23, 32  ;;  %p3156_p5 = scmp.lt.s32.totalorder %s171_s23, %s171_s23 }
  0x1e   : > { %p3149_p8 = scmp.ne.s32.totalorder %s171_s23, %s3148_s8  ;;  %p3157_p6 = scmp.lt.s32.totalorder %s3148_s8, %s3148_s8 }
  0x20   : > { %p3151_p2 = pnand %p3149_p8, %p3137_p1  ;;  %p3158_p11 = por %p3157_p6, %p3156_p5 }
  0x22   : > { %p3152_p12 = pneg %p3151_p2 }
  0x24   : > { %p3159_p10 = pnand %p3158_p11, %p3152_p12 }
  0x26   : > { %3162 = shalt.err (!%p3159_p10)
}
  0x27   : > { %2669 = dma.hbm_to_vmem [thread:$0]  (!%p3393_p9), %s3886_s2, 32, %s171_s23, [#allocation7]  }
  0x28   : > { %p3896_p2 = scmp.ne.s32.totalorder %s3894_s26, 0  ;;  %s3431_s11 = sand.u32 1, %s3299_s14  }
  0x29   : > { %s2651_s12 = sshll.u32 %s3307_s16, 10  ;;  %s2362_s24 = sshll.u32 %s3431_s11, 6 }
  0x2a   : > { %s3910_s25 = smov (%p3896_p2, %s32_s25), 0  ;;  %s3440_s30 = scalar_lea.hbm %s3884_s0, %s2651_s12 }
  0x2b   : > { %s44_s22 = ssub.s32 %s3307_s16, %s3910_s25  ;;  %s185_s26 = scalar_lea.vmem [#allocation3], %s2362_s24 }
  0x2c   : > { %p46_p5 = scmp.eq.s32.totalorder %s44_s22, 0  ;;  %s195_s4 = sshll.u32 %s185_s26, 4  ;;  %s3455_s4 = int_to_ptr.vmem [resolvable:$true] %s195_s4 }
  0x2d   : > { %p3897_p6 = scmp.ne.s32.totalorder %s3895_s27, 0  ;;  %p3898_p9 = scmp.lt.s32.totalorder %s3311_s17, 2 }
  0x2e   : > { %s3445_s23 = scalar_select %p46_p5, %s3299_s14, %s48_s19  }
  0x2f   : > { %p3451_p10 = pnand %p3898_p9, %p3897_p6  ;;  %s2365_s6 = sshll.u32 %s3431_s11, 11 }
  0x30   : > { %s182_s7 = scalar_lea.sflag [#allocation4], %s3431_s11  ;;  %s3163_s8 = scalar_lea.hbm %s3440_s30, 1024 }
  0x31   : > { %p3164_p11 = scmp.ne.s32.totalorder %s3440_s30, %s3163_s8  ;;  %p3165_p12 = pneg %p3451_p10 }
  0x32   : > { %s3168_s9 = scalar_lea.hbm %s3884_s0, 2048  ;;  %p3169_p3 = scmp.lt.u32.totalorder %s3440_s30, %s3884_s0 }
  0x33   : > { %p3166_p13 = pnand %p3165_p12, %p3164_p11  ;;  %p3170_p4 = scmp.lt.u32.totalorder %s3168_s9, %s3163_s8 }
  0x34   : > { %p3172_p7 = scmp.lt.u32.totalorder %s3163_s8, %s3440_s30 }
  0x35   : > { %p3167_p1 = pneg %p3166_p13  ;;  %p3171_p0 = por %p3170_p4, %p3169_p3 }
  0x37   : > { %p3173_p8 = por %p3172_p7, %p3171_p0 }
  0x39   : > { %p3174_p2 = pnand %p3173_p8, %p3167_p1 }
  0x3b   : > { %3177 = shalt.err (!%p3174_p2)
}
  0x3c   : > { %s3178_s22 = scalar_lea.vmem %s3455_s4, 1024  ;;  %s3314_s24 = smov [#allocation3]  }
  0x3d   : > { %p3179_p5 = scmp.ne.s32.totalorder %s3455_s4, %s3178_s22  ;;  %s3183_s28 = sshll.u32 %s3314_s24, 4  ;;  %s3184_s28 = int_to_ptr.vmem [resolvable:$false] %s3183_s28 }
  0x3e   : > { %s3185_s29 = scalar_lea.vmem %s3184_s28, 2048  ;;  %p3186_p11 = scmp.lt.s32.totalorder %s3455_s4, %s3184_s28 }
  0x3f   : > { %p3181_p6 = pnand %p3179_p5, %p3165_p12  ;;  %p3187_p13 = scmp.lt.s32.totalorder %s3185_s29, %s3178_s22 }
  0x41   : > { %p3182_p9 = pneg %p3181_p6  ;;  %p3188_p3 = por %p3187_p13, %p3186_p11 }
  0x43   : > { %p3189_p4 = pnand %p3188_p3, %p3182_p9 }
  0x45   : > { %3192 = shalt.err (!%p3189_p4)
}
  0x46   : > { %2673 = dma.hbm_to_vmem [thread:$0]  (!%p3451_p10), %s3440_s30, 1024, %s3455_s4, %s182_s7  }
  0x47   : > { %s2653_s26 = sshll.u32 %s3307_s16, 15  ;;  %s206_s8 = scalar_lea.vmem [#allocation6], %s2365_s6 }
  0x48   : > { %s216_s19 = sshll.u32 %s206_s8, 4  ;;  %s202_s27 = sand.u32 1, %s3311_s17   ;;  %s3487_s19 = int_to_ptr.vmem [resolvable:$true] %s216_s19 }
  0x49   : > { %s3493_s12 = scalar_lea.hbm %s3885_s1, %s2653_s26  ;;  %s3495_s22 = scalar_lea.sflag [#allocation7], %s202_s27 }
  0x4a   : > { %s3193_s24 = scalar_lea.hbm %s3493_s12, 32768  ;;  %s3198_s4 = scalar_lea.hbm %s3885_s1, 65536 }
  0x4b   : > { %p3194_p1 = scmp.ne.s32.totalorder %s3493_s12, %s3193_s24  ;;  %p3199_p8 = scmp.lt.u32.totalorder %s3493_s12, %s3885_s1 }
  0x4c   : > { %p3200_p2 = scmp.lt.u32.totalorder %s3198_s4, %s3193_s24  ;;  %p3202_p6 = scmp.lt.u32.totalorder %s3193_s24, %s3493_s12 }
  0x4d   : > { %p3196_p0 = pnand %p3194_p1, %p3165_p12 }
  0x4e   : > { %p3201_p5 = por %p3200_p2, %p3199_p8 }
  0x4f   : > { %p3197_p7 = pneg %p3196_p0 }
  0x50   : > { %p3203_p9 = por %p3202_p6, %p3201_p5 }
  0x52   : > { %p3204_p11 = pnand %p3203_p9, %p3197_p7 }
  0x54   : > { %3207 = shalt.err (!%p3204_p11)
}
  0x55   : > { %s3208_s28 = scalar_lea.vmem %s3487_s19, 32768  ;;  %s3315_s29 = smov [#allocation6]  }
  0x56   : > { %p3209_p13 = scmp.ne.s32.totalorder %s3487_s19, %s3208_s28  ;;  %s3213_s26 = sshll.u32 %s3315_s29, 4  ;;  %s3214_s26 = int_to_ptr.vmem [resolvable:$false] %s3213_s26 }
  0x57   : > { %s3215_s8 = scalar_lea.vmem %s3214_s26, 65536  ;;  %p3216_p1 = scmp.lt.s32.totalorder %s3487_s19, %s3214_s26 }
  0x58   : > { %p3211_p3 = pnand %p3209_p13, %p3165_p12  ;;  %p3217_p0 = scmp.lt.s32.totalorder %s3215_s8, %s3208_s28 }
  0x5a   : > { %p3212_p4 = pneg %p3211_p3  ;;  %p3218_p8 = por %p3217_p0, %p3216_p1 }
  0x5c   : > { %p3219_p2 = pnand %p3218_p8, %p3212_p4 }
  0x5e   : > { %3222 = shalt.err (!%p3219_p2)
}
  0x5f   : > { %s3316_s27 = smov 128   ;;  %s3317_s9 = smov 8  }
  0x60   : > { %2676 = dma.hbm_to_vmem [thread:$0]  (!%p3451_p10), %s3493_s12, 32768, %s3487_s19, %s3495_s22, %s3316_s27, %s3316_s27, %s3317_s9  }
  0x61   : > { %p3900_p12 = scmp.ne.s32.totalorder %s3892_s21, 0 }
  0x62   : > { %s230_s10 = sand.u32 (!%p3900_p12), 1, %s3295_s13   ;;  %p3901_p7 = scmp.ne.s32.totalorder (!%p3900_p12), %s3891_s20, 0 }
  0x63   : > { %228 = sbr.rel (%p3900_p12) target bundleno = 636 (0x27c), region = 32  ;;  %s2370_s24 = sshll.u32 (!%p3900_p12), %s230_s10, 6 }
  0x64   : > { %s231_s11 = scalar_lea.sflag (!%p3900_p12), [#allocation4], %s230_s10  ;;  %s3524_s30 = scalar_lea.vmem (!%p3900_p12), [#allocation3], %s2370_s24 }
  0x6a   : > { %3274 = dma.done.wait (%p3901_p7), %s231_s11, 1024  }
  0x6b   : > { %3276 = vsyncadd (%p3901_p7), %s231_s11, 4294966272  ;;  %s239_s4 = sand.u32 1, %s3369_s18   ;;  %s2371_s5 = sshll.u32 %s230_s10, 11 }
  0x6c   : > { %s240_s19 = scalar_lea.sflag [#allocation7], %s239_s4  ;;  %s3531_s12 = scalar_lea.vmem [#allocation6], %s2371_s5 }
  0x6d   : > { %3278 = dma.done.wait (%p3901_p7), %s240_s19, 32768  }
  0x6e   : > { %3280 = vsyncadd (%p3901_p7), %s240_s19, 4294934528  ;;  %p3902_p10 = scmp.eq.s32.totalorder %s3369_s18, 0 }
  0x70   : > { %3282 = dma.done.wait (%p3902_p10), [#allocation7], 32   ;;  %p3903_p5 = pmov %p3902_p10 }
  0x71   : > { %p2373_p6 = scmp.ne.s32.totalorder %s3303_s15, 0 }
  0x72   : > { %3284 = vsyncadd (%p3903_p5), [#allocation7], 4294967264  ;;  %v3318_v0 = vmov (!%p2373_p6), 0.0  }
  0x73   : > { %278 = sbr.rel (%p2373_p6) target bundleno = 122 (0x7a), region = 48  ;;  %279 = vst [vmem:[#allocation2] sm:$0xff] (!%p2373_p6), %v3318_v0  ;;  %280 = vst [vmem:[#allocation2 + $0x8] sm:$0xff] (!%p2373_p6), %v3318_v0 }
  0x7a PF: > { %v2735_v1 = vld [vmem:[%s3531_s12 + $0x4] ss:$8 sps:$4 sm:$0xff]   ;;  %v2739_v3 = vld [vmem:[%s3531_s12] ss:$8 sps:$4 sm:$0xff]   ;;  %v2741_v5 = vld [vmem:[%s3531_s12 + $0x14] ss:$8 sps:$4 sm:$0xff]  }
  0x7b   : > { %v2737_v2 = vld [vmem:[%s3531_s12 + $0x104] ss:$8 sps:$4 sm:$0xff]   ;;  %1883 = vmatprep.subr.bf16.mxu0 %v2735_v1  ;;  %v2740_v4 = vld [vmem:[%s3531_s12 + $0x100] ss:$8 sps:$4 sm:$0xff]   ;;  %v2743_v6 = vld [vmem:[%s3531_s12 + $0x114] ss:$8 sps:$4 sm:$0xff]  }
  0x7c   : > { %1924 = vmatprep.subr.bf16.mxu1 %v2737_v2  ;;  %1884 = vmatpush1.bf16.msra.mxu0 %v2739_v3  ;;  %v2745_v7 = vld [vmem:[%s3531_s12 + $0x10] ss:$8 sps:$4 sm:$0xff]   ;;  %v2747_v9 = vld [vmem:[%s3531_s12 + $0x24] ss:$8 sps:$4 sm:$0xff]   ;;  %v2751_v11 = vld [vmem:[%s3531_s12 + $0x20] ss:$8 sps:$4 sm:$0xff]  }
  0x7d   : > { %1925 = vmatpush1.bf16.msra.mxu1 %v2740_v4  ;;  %1885 = vmatprep.subr.bf16.mxu0 %v2741_v5  ;;  %v2746_v8 = vld [vmem:[%s3531_s12 + $0x110] ss:$8 sps:$4 sm:$0xff]   ;;  %v2749_v10 = vld [vmem:[%s3531_s12 + $0x124] ss:$8 sps:$4 sm:$0xff]   ;;  %v2752_v12 = vld [vmem:[%s3531_s12 + $0x120] ss:$8 sps:$4 sm:$0xff]  }
  0x7e   : > { %1926 = vmatprep.subr.bf16.mxu1 %v2743_v6  ;;  %v2753_v13 = vld [vmem:[%s3531_s12 + $0x34] ss:$8 sps:$4 sm:$0xff]   ;;  %v2757_v15 = vld [vmem:[%s3531_s12 + $0x30] ss:$8 sps:$4 sm:$0xff]   ;;  %v2759_v17 = vld [vmem:[%s3531_s12 + $0x44] ss:$8 sps:$4 sm:$0xff]  }
  0x7f   : > { %v2755_v14 = vld [vmem:[%s3531_s12 + $0x134] ss:$8 sps:$4 sm:$0xff]   ;;  %v2758_v16 = vld [vmem:[%s3531_s12 + $0x130] ss:$8 sps:$4 sm:$0xff]   ;;  %v2761_v18 = vld [vmem:[%s3531_s12 + $0x144] ss:$8 sps:$4 sm:$0xff]  }
  0x80   : > { %1886 = vmatpush1.bf16.msra.mxu0 %v2745_v7  ;;  %v2763_v19 = vld [vmem:[%s3531_s12 + $0x40] ss:$8 sps:$4 sm:$0xff]   ;;  %v2765_v21 = vld [vmem:[%s3531_s12 + $0x54] ss:$8 sps:$4 sm:$0xff]   ;;  %v2769_v23 = vld [vmem:[%s3531_s12 + $0x50] ss:$8 sps:$4 sm:$0xff]  }
  0x81   : > { %1927 = vmatpush1.bf16.msra.mxu1 %v2746_v8  ;;  %1887 = vmatprep.subr.bf16.mxu0 %v2747_v9  ;;  %v2764_v20 = vld [vmem:[%s3531_s12 + $0x140] ss:$8 sps:$4 sm:$0xff]   ;;  %v2767_v22 = vld [vmem:[%s3531_s12 + $0x154] ss:$8 sps:$4 sm:$0xff]   ;;  %v2770_v24 = vld [vmem:[%s3531_s12 + $0x150] ss:$8 sps:$4 sm:$0xff]  }
  0x82   : > { %1928 = vmatprep.subr.bf16.mxu1 %v2749_v10  ;;  %v2771_v25 = vld [vmem:[%s3531_s12 + $0x64] ss:$8 sps:$4 sm:$0xff]   ;;  %v2775_v27 = vld [vmem:[%s3531_s12 + $0x60] ss:$8 sps:$4 sm:$0xff]   ;;  %v2777_v29 = vld [vmem:[%s3531_s12 + $0x74] ss:$8 sps:$4 sm:$0xff]  }
  0x83   : > { %v2773_v26 = vld [vmem:[%s3531_s12 + $0x164] ss:$8 sps:$4 sm:$0xff]   ;;  %v2776_v28 = vld [vmem:[%s3531_s12 + $0x160] ss:$8 sps:$4 sm:$0xff]   ;;  %v2779_v30 = vld [vmem:[%s3531_s12 + $0x174] ss:$8 sps:$4 sm:$0xff]  }
  0x84   : > { %1888 = vmatpush1.bf16.msra.mxu0 %v2751_v11  ;;  %v2781_v31 = vld [vmem:[%s3531_s12 + $0x70] ss:$8 sps:$4 sm:$0xff]   ;;  %v2783_v33 = vld [vmem:[%s3531_s12 + $0x84] ss:$8 sps:$4 sm:$0xff]   ;;  %v2787_v35 = vld [vmem:[%s3531_s12 + $0x80] ss:$8 sps:$4 sm:$0xff]  }
  0x85   : > { %1929 = vmatpush1.bf16.msra.mxu1 %v2752_v12  ;;  %1889 = vmatprep.subr.bf16.mxu0 %v2753_v13  ;;  %v2782_v32 = vld [vmem:[%s3531_s12 + $0x170] ss:$8 sps:$4 sm:$0xff]   ;;  %v2785_v34 = vld [vmem:[%s3531_s12 + $0x184] ss:$8 sps:$4 sm:$0xff]   ;;  %v2788_v36 = vld [vmem:[%s3531_s12 + $0x180] ss:$8 sps:$4 sm:$0xff]  }
  0x86   : > { %1930 = vmatprep.subr.bf16.mxu1 %v2755_v14  ;;  %v2789_v37 = vld [vmem:[%s3531_s12 + $0x94] ss:$8 sps:$4 sm:$0xff]   ;;  %v2793_v39 = vld [vmem:[%s3531_s12 + $0x90] ss:$8 sps:$4 sm:$0xff]   ;;  %v2795_v41 = vld [vmem:[%s3531_s12 + $0xa4] ss:$8 sps:$4 sm:$0xff]  }
  0x87   : > { %v2791_v38 = vld [vmem:[%s3531_s12 + $0x194] ss:$8 sps:$4 sm:$0xff]   ;;  %v2794_v40 = vld [vmem:[%s3531_s12 + $0x190] ss:$8 sps:$4 sm:$0xff]   ;;  %v2797_v42 = vld [vmem:[%s3531_s12 + $0x1a4] ss:$8 sps:$4 sm:$0xff]  }
  0x88   : > { %1890 = vmatpush1.bf16.msra.mxu0 %v2757_v15  ;;  %v2799_v43 = vld [vmem:[%s3531_s12 + $0xa0] ss:$8 sps:$4 sm:$0xff]   ;;  %v2801_v45 = vld [vmem:[%s3531_s12 + $0xb4] ss:$8 sps:$4 sm:$0xff]   ;;  %v2805_v50 = vld [vmem:[%s3531_s12 + $0xb0] ss:$8 sps:$4 sm:$0xff]  }
  0x89   : > { %1931 = vmatpush1.bf16.msra.mxu1 %v2758_v16  ;;  %1891 = vmatprep.subr.bf16.mxu0 %v2759_v17  ;;  %v2800_v44 = vld [vmem:[%s3531_s12 + $0x1a0] ss:$8 sps:$4 sm:$0xff]   ;;  %v2803_v46 = vld [vmem:[%s3531_s12 + $0x1b4] ss:$8 sps:$4 sm:$0xff]   ;;  %v2806_v51 = vld [vmem:[%s3531_s12 + $0x1b0] ss:$8 sps:$4 sm:$0xff]  }
  0x8a   : > { %1932 = vmatprep.subr.bf16.mxu1 %v2761_v18  ;;  %v283_v47 = vld [vmem:[%s3524_s30] sm:$0xff]  ;;  %v284_v49 = vld [vmem:[%s3524_s30 + $0x8] sm:$0xff]  ;;  %v2813_v57 = vld [vmem:[%s3531_s12 + $0xd4] ss:$8 sps:$4 sm:$0xff]   ;;  %p2646_p9 = scmp.ne.s32.totalorder %s3303_s15, 1 }
  0x8b   : > { %v2375_v48 = vcombine.high %v283_v47, %v283_v47  ;;  %v2377_v52 = vcombine.high %v284_v49, %v284_v49  ;;  %v2807_v53 = vld [vmem:[%s3531_s12 + $0xc4] ss:$8 sps:$4 sm:$0xff]   ;;  %v2811_v55 = vld [vmem:[%s3531_s12 + $0xc0] ss:$8 sps:$4 sm:$0xff]   ;;  %v2815_v58 = vld [vmem:[%s3531_s12 + $0x1d4] ss:$8 sps:$4 sm:$0xff]   ;;  %v2374_v7 = vcombine.low %v283_v47, %v283_v47  ;;  %v2376_v8 = vcombine.low %v284_v49, %v284_v49 }
  0x8c   : > { %1892 = vmatpush1.bf16.msra.mxu0 %v2763_v19  ;;  %v2809_v54 = vld [vmem:[%s3531_s12 + $0x1c4] ss:$8 sps:$4 sm:$0xff]   ;;  %v2812_v56 = vld [vmem:[%s3531_s12 + $0x1c0] ss:$8 sps:$4 sm:$0xff]   ;;  %v2817_v59 = vld [vmem:[%s3531_s12 + $0xd0] ss:$8 sps:$4 sm:$0xff]  }
  0x8d   : > { %1933 = vmatpush1.bf16.msra.mxu1 %v2764_v20  ;;  %1893 = vmatprep.subr.bf16.mxu0 %v2765_v21  ;;  %v2818_v60 = vld [vmem:[%s3531_s12 + $0x1d0] ss:$8 sps:$4 sm:$0xff]   ;;  %v2819_v61 = vld [vmem:[%s3531_s12 + $0xe4] ss:$8 sps:$4 sm:$0xff]   ;;  %v2823_v63 = vld [vmem:[%s3531_s12 + $0xe0] ss:$8 sps:$4 sm:$0xff]  }
  0x8e   : > { %1934 = vmatprep.subr.bf16.mxu1 %v2767_v22  ;;  %1915 = vmatprep.mubr.bf16.mxu0 %v2375_v48  ;;  %v2821_v62 = vld [vmem:[%s3531_s12 + $0x1e4] ss:$8 sps:$4 sm:$0xff]   ;;  %v2824_v0 = vld [vmem:[%s3531_s12 + $0x1e0] ss:$8 sps:$4 sm:$0xff]   ;;  %v2825_v1 = vld [vmem:[%s3531_s12 + $0xf4] ss:$8 sps:$4 sm:$0xff]  }
  0x8f   : > { %1956 = vmatprep.mubr.bf16.mxu1 %v2377_v52  ;;  %v2827_v2 = vld [vmem:[%s3531_s12 + $0x1f4] ss:$8 sps:$4 sm:$0xff]   ;;  %v2829_v3 = vld [vmem:[%s3531_s12 + $0xf0] ss:$8 sps:$4 sm:$0xff]   ;;  %v2837_v5 = vld [vmem:[%s3531_s12 + $0x204] ss:$8 sps:$4 sm:$0xff]  }
  0x90   : > { %1894 = vmatpush1.bf16.msra.mxu0 %v2769_v23  ;;  %v2830_v4 = vld [vmem:[%s3531_s12 + $0x1f0] ss:$8 sps:$4 sm:$0xff]   ;;  %v2840_v6 = vld [vmem:[%s3531_s12 + $0x304] ss:$8 sps:$4 sm:$0xff]   ;;  %v2835_v9 = vld [vmem:[%s3531_s12 + $0x200] ss:$8 sps:$4 sm:$0xff]  }
  0x91   : > { %1935 = vmatpush1.bf16.msra.mxu1 %v2770_v24  ;;  %1895 = vmatprep.subr.bf16.mxu0 %v2771_v25  ;;  %v2838_v10 = vld [vmem:[%s3531_s12 + $0x300] ss:$8 sps:$4 sm:$0xff]   ;;  %v2843_v11 = vld [vmem:[%s3531_s12 + $0x214] ss:$8 sps:$4 sm:$0xff]   ;;  %v2841_v13 = vld [vmem:[%s3531_s12 + $0x210] ss:$8 sps:$4 sm:$0xff]  }
  0x92   : > { %1936 = vmatprep.subr.bf16.mxu1 %v2773_v26  ;;  %v2846_v12 = vld [vmem:[%s3531_s12 + $0x314] ss:$8 sps:$4 sm:$0xff]   ;;  %v2844_v14 = vld [vmem:[%s3531_s12 + $0x310] ss:$8 sps:$4 sm:$0xff]   ;;  %v2849_v15 = vld [vmem:[%s3531_s12 + $0x224] ss:$8 sps:$4 sm:$0xff]  }
  0x93   : > { %v2852_v16 = vld [vmem:[%s3531_s12 + $0x324] ss:$8 sps:$4 sm:$0xff]   ;;  %v2847_v17 = vld [vmem:[%s3531_s12 + $0x220] ss:$8 sps:$4 sm:$0xff]   ;;  %v2855_v19 = vld [vmem:[%s3531_s12 + $0x234] ss:$8 sps:$4 sm:$0xff]  }
  0x94   : > { %1896 = vmatpush1.bf16.msra.mxu0 %v2775_v27  ;;  %v2850_v18 = vld [vmem:[%s3531_s12 + $0x320] ss:$8 sps:$4 sm:$0xff]   ;;  %v2858_v20 = vld [vmem:[%s3531_s12 + $0x334] ss:$8 sps:$4 sm:$0xff]   ;;  %v2853_v21 = vld [vmem:[%s3531_s12 + $0x230] ss:$8 sps:$4 sm:$0xff]  }
  0x95   : > { %1937 = vmatpush1.bf16.msra.mxu1 %v2776_v28  ;;  %1897 = vmatprep.subr.bf16.mxu0 %v2777_v29  ;;  %v2856_v22 = vld [vmem:[%s3531_s12 + $0x330] ss:$8 sps:$4 sm:$0xff]   ;;  %v2861_v23 = vld [vmem:[%s3531_s12 + $0x244] ss:$8 sps:$4 sm:$0xff]   ;;  %v2859_v25 = vld [vmem:[%s3531_s12 + $0x240] ss:$8 sps:$4 sm:$0xff]  }
  0x96   : > { %1938 = vmatprep.subr.bf16.mxu1 %v2779_v30  ;;  %v2864_v24 = vld [vmem:[%s3531_s12 + $0x344] ss:$8 sps:$4 sm:$0xff]   ;;  %v2862_v26 = vld [vmem:[%s3531_s12 + $0x340] ss:$8 sps:$4 sm:$0xff]   ;;  %v2867_v27 = vld [vmem:[%s3531_s12 + $0x254] ss:$8 sps:$4 sm:$0xff]  }
  0x97   : > { %v2870_v28 = vld [vmem:[%s3531_s12 + $0x354] ss:$8 sps:$4 sm:$0xff]   ;;  %v2865_v29 = vld [vmem:[%s3531_s12 + $0x250] ss:$8 sps:$4 sm:$0xff]   ;;  %v2900_v52 = vld [vmem:[%s3531_s12 + $0x3a4] ss:$8 sps:$4 sm:$0xff]  }
  0x98   : > { %1898 = vmatpush1.bf16.msra.mxu0 %v2781_v31  ;;  %v2868_v30 = vld [vmem:[%s3531_s12 + $0x350] ss:$8 sps:$4 sm:$0xff]   ;;  %v2873_v31 = vld [vmem:[%s3531_s12 + $0x264] ss:$8 sps:$4 sm:$0xff]   ;;  %v2891_v47 = vld [vmem:[%s3531_s12 + $0x294] ss:$8 sps:$4 sm:$0xff]  }
  0x99   : > { %1939 = vmatpush1.bf16.msra.mxu1 %v2782_v32  ;;  %1899 = vmatprep.subr.bf16.mxu0 %v2783_v33  ;;  %v2876_v32 = vld [vmem:[%s3531_s12 + $0x364] ss:$8 sps:$4 sm:$0xff]   ;;  %v3635_v33 = vld [vmem:[%s3524_s30 + $0x10] sm:$0xff] }
  0x9a   : > { %1940 = vmatprep.subr.bf16.mxu1 %v2785_v34  ;;  %v3638_v34 = vld [vmem:[%s3524_s30 + $0x18] sm:$0xff] }
  0x9b   : > { %v2894_v48 = vld [vmem:[%s3531_s12 + $0x394] ss:$8 sps:$4 sm:$0xff]   ;;  %v2889_v49 = vld [vmem:[%s3531_s12 + $0x290] ss:$8 sps:$4 sm:$0xff]  }
  0x9c   : > { %1900 = vmatpush1.bf16.msra.mxu0 %v2787_v35  ;;  %v2871_v35 = vld [vmem:[%s3531_s12 + $0x260] ss:$8 sps:$4 sm:$0xff]  }
  0x9d   : > { %1941 = vmatpush1.bf16.msra.mxu1 %v2788_v36  ;;  %1901 = vmatprep.subr.bf16.mxu0 %v2789_v37  ;;  %v2874_v36 = vld [vmem:[%s3531_s12 + $0x360] ss:$8 sps:$4 sm:$0xff]   ;;  %v2379_v37 = vcombine.high %v3635_v33, %v3635_v33 }
  0x9e   : > { %1942 = vmatprep.subr.bf16.mxu1 %v2791_v38  ;;  %v2381_v38 = vcombine.high %v3638_v34, %v3638_v34 }
  0xa0   : > { %1902 = vmatpush1.bf16.msra.mxu0 %v2793_v39  ;;  %v2879_v39 = vld [vmem:[%s3531_s12 + $0x274] ss:$8 sps:$4 sm:$0xff]  }
  0xa1   : > { %1943 = vmatpush1.bf16.msra.mxu1 %v2794_v40  ;;  %1903 = vmatprep.subr.bf16.mxu0 %v2795_v41  ;;  %v2882_v40 = vld [vmem:[%s3531_s12 + $0x374] ss:$8 sps:$4 sm:$0xff]   ;;  %v2877_v41 = vld [vmem:[%s3531_s12 + $0x270] ss:$8 sps:$4 sm:$0xff]  }
  0xa2   : > { %1944 = vmatprep.subr.bf16.mxu1 %v2797_v42  ;;  %v2880_v42 = vld [vmem:[%s3531_s12 + $0x370] ss:$8 sps:$4 sm:$0xff]  }
  0xa4   : > { %1904 = vmatpush1.bf16.msra.mxu0 %v2799_v43  ;;  %v2885_v43 = vld [vmem:[%s3531_s12 + $0x284] ss:$8 sps:$4 sm:$0xff]  }
  0xa5   : > { %1945 = vmatpush1.bf16.msra.mxu1 %v2800_v44  ;;  %1905 = vmatprep.subr.bf16.mxu0 %v2801_v45  ;;  %v2888_v44 = vld [vmem:[%s3531_s12 + $0x384] ss:$8 sps:$4 sm:$0xff]   ;;  %v2883_v45 = vld [vmem:[%s3531_s12 + $0x280] ss:$8 sps:$4 sm:$0xff]  }
  0xa6   : > { %1946 = vmatprep.subr.bf16.mxu1 %v2803_v46  ;;  %v2886_v46 = vld [vmem:[%s3531_s12 + $0x380] ss:$8 sps:$4 sm:$0xff]  }
  0xa8   : > { %1906 = vmatpush1.bf16.msra.mxu0 %v2805_v50  ;;  %v2892_v50 = vld [vmem:[%s3531_s12 + $0x390] ss:$8 sps:$4 sm:$0xff]  }
  0xa9   : > { %1947 = vmatpush1.bf16.msra.mxu1 %v2806_v51  ;;  %1907 = vmatprep.subr.bf16.mxu0 %v2807_v53  ;;  %v2897_v51 = vld [vmem:[%s3531_s12 + $0x2a4] ss:$8 sps:$4 sm:$0xff]   ;;  %v2895_v53 = vld [vmem:[%s3531_s12 + $0x2a0] ss:$8 sps:$4 sm:$0xff]  }
  0xaa   : > { %1948 = vmatprep.subr.bf16.mxu1 %v2809_v54  ;;  %v2898_v54 = vld [vmem:[%s3531_s12 + $0x3a0] ss:$8 sps:$4 sm:$0xff]  }
  0xac   : > { %1908 = vmatpush1.bf16.msra.mxu0 %v2811_v55  ;;  %v2903_v55 = vld [vmem:[%s3531_s12 + $0x2b4] ss:$8 sps:$4 sm:$0xff]  }
  0xad   : > { %1949 = vmatpush1.bf16.msra.mxu1 %v2812_v56  ;;  %1909 = vmatprep.subr.bf16.mxu0 %v2813_v57  ;;  %v2906_v56 = vld [vmem:[%s3531_s12 + $0x3b4] ss:$8 sps:$4 sm:$0xff]   ;;  %v2901_v57 = vld [vmem:[%s3531_s12 + $0x2b0] ss:$8 sps:$4 sm:$0xff]  }
  0xae   : > { %1950 = vmatprep.subr.bf16.mxu1 %v2815_v58  ;;  %v2904_v58 = vld [vmem:[%s3531_s12 + $0x3b0] ss:$8 sps:$4 sm:$0xff]  }
  0xb0   : > { %1910 = vmatpush1.bf16.msra.mxu0 %v2817_v59  ;;  %v2909_v59 = vld [vmem:[%s3531_s12 + $0x2c4] ss:$8 sps:$4 sm:$0xff]  }
  0xb1   : > { %1951 = vmatpush1.bf16.msra.mxu1 %v2818_v60  ;;  %1911 = vmatprep.subr.bf16.mxu0 %v2819_v61  ;;  %v2912_v60 = vld [vmem:[%s3531_s12 + $0x3c4] ss:$8 sps:$4 sm:$0xff]   ;;  %v2907_v61 = vld [vmem:[%s3531_s12 + $0x2c0] ss:$8 sps:$4 sm:$0xff]  }
  0xb2   : > { %1952 = vmatprep.subr.bf16.mxu1 %v2821_v62  ;;  %v2910_v62 = vld [vmem:[%s3531_s12 + $0x3c0] ss:$8 sps:$4 sm:$0xff]  }
  0xb4   : > { %1912 = vmatpush1.bf16.msra.mxu0 %v2823_v63  ;;  %v2915_v63 = vld [vmem:[%s3531_s12 + $0x2d4] ss:$8 sps:$4 sm:$0xff]  }
  0xb5   : > { %1953 = vmatpush1.bf16.msra.mxu1 %v2824_v0  ;;  %1913 = vmatprep.subr.bf16.mxu0 %v2825_v1  ;;  %v2918_v0 = vld [vmem:[%s3531_s12 + $0x3d4] ss:$8 sps:$4 sm:$0xff]   ;;  %v2913_v1 = vld [vmem:[%s3531_s12 + $0x2d0] ss:$8 sps:$4 sm:$0xff]  }
  0xb6   : > { %1954 = vmatprep.subr.bf16.mxu1 %v2827_v2  ;;  %v2916_v2 = vld [vmem:[%s3531_s12 + $0x3d0] ss:$8 sps:$4 sm:$0xff]  }
  0xb8   : > { %1914 = vmatpush1.bf16.msra.mxu0 %v2829_v3  ;;  %v2921_v3 = vld [vmem:[%s3531_s12 + $0x2e4] ss:$8 sps:$4 sm:$0xff]  }
  0xb9   : > { %1955 = vmatpush1.bf16.msra.mxu1 %v2830_v4  ;;  %1965 = vmatprep.subr.bf16.mxu0 %v2837_v5  ;;  %v2924_v4 = vld [vmem:[%s3531_s12 + $0x3e4] ss:$8 sps:$4 sm:$0xff]   ;;  %v2919_v5 = vld [vmem:[%s3531_s12 + $0x2e0] ss:$8 sps:$4 sm:$0xff]  }
  0xba   : > { %2006 = vmatprep.subr.bf16.mxu1 %v2840_v6  ;;  %v2922_v6 = vld [vmem:[%s3531_s12 + $0x3e0] ss:$8 sps:$4 sm:$0xff]  }
  0xbb   : > { %1916 = vmatmul.mubr.bf16.vlgmr.msra.gmra.mrb[0].mxu0 %v2374_v7  ;;  %v2927_v7 = vld [vmem:[%s3531_s12 + $0x2f4] ss:$8 sps:$4 sm:$0xff]  }
  0xbc   : > { %1957 = vmatmul.mubr.bf16.vlgmr.msra.gmra.mrb[0].mxu1 %v2376_v8  ;;  %1966 = vmatpush1.bf16.msra.mxu0 %v2835_v9  ;;  %v2930_v8 = vld [vmem:[%s3531_s12 + $0x3f4] ss:$8 sps:$4 sm:$0xff]   ;;  %v2925_v9 = vld [vmem:[%s3531_s12 + $0x2f0] ss:$8 sps:$4 sm:$0xff]  }
  0xbd   : > { %2007 = vmatpush1.bf16.msra.mxu1 %v2838_v10  ;;  %1967 = vmatprep.subr.bf16.mxu0 %v2843_v11  ;;  %v2928_v10 = vld [vmem:[%s3531_s12 + $0x3f0] ss:$8 sps:$4 sm:$0xff]   ;;  %v2937_v11 = vld [vmem:[%s3531_s12 + $0x404] ss:$8 sps:$4 sm:$0xff]  }
  0xbe   : > { %2008 = vmatprep.subr.bf16.mxu1 %v2846_v12  ;;  %1997 = vmatprep.mubr.bf16.mxu0 %v2379_v37  ;;  %v2940_v12 = vld [vmem:[%s3531_s12 + $0x504] ss:$8 sps:$4 sm:$0xff]   ;;  %v2967_v37 = vld [vmem:[%s3531_s12 + $0x454] ss:$8 sps:$4 sm:$0xff]  }
  0xbf   : > { %2038 = vmatprep.mubr.bf16.mxu1 %v2381_v38  ;;  %v2970_v38 = vld [vmem:[%s3531_s12 + $0x554] ss:$8 sps:$4 sm:$0xff]  }
  0xc0   : > { %1968 = vmatpush1.bf16.msra.mxu0 %v2841_v13  ;;  %v2378_v13 = vcombine.low %v3635_v33, %v3635_v33  ;;  %v2961_v33 = vld [vmem:[%s3531_s12 + $0x444] ss:$8 sps:$4 sm:$0xff]  }
  0xc1   : > { %2009 = vmatpush1.bf16.msra.mxu1 %v2844_v14  ;;  %1969 = vmatprep.subr.bf16.mxu0 %v2849_v15  ;;  %v2380_v14 = vcombine.low %v3638_v34, %v3638_v34  ;;  %v2935_v15 = vld [vmem:[%s3531_s12 + $0x400] ss:$8 sps:$4 sm:$0xff]   ;;  %v2964_v34 = vld [vmem:[%s3531_s12 + $0x544] ss:$8 sps:$4 sm:$0xff]  }
  0xc2   : > { %2010 = vmatprep.subr.bf16.mxu1 %v2852_v16  ;;  %v2938_v16 = vld [vmem:[%s3531_s12 + $0x500] ss:$8 sps:$4 sm:$0xff]  }
  0xc4   : > { %1970 = vmatpush1.bf16.msra.mxu0 %v2847_v17  ;;  %v2943_v17 = vld [vmem:[%s3531_s12 + $0x414] ss:$8 sps:$4 sm:$0xff]  }
  0xc5   : > { %2011 = vmatpush1.bf16.msra.mxu1 %v2850_v18  ;;  %1971 = vmatprep.subr.bf16.mxu0 %v2855_v19  ;;  %v2946_v18 = vld [vmem:[%s3531_s12 + $0x514] ss:$8 sps:$4 sm:$0xff]   ;;  %v3693_v19 = vld [vmem:[%s3524_s30 + $0x20] sm:$0xff] }
  0xc6   : > { %2012 = vmatprep.subr.bf16.mxu1 %v2858_v20  ;;  %v3696_v20 = vld [vmem:[%s3524_s30 + $0x28] sm:$0xff] }
  0xc8   : > { %1972 = vmatpush1.bf16.msra.mxu0 %v2853_v21  ;;  %v2383_v21 = vcombine.high %v3693_v19, %v3693_v19 }
  0xc9   : > { %2013 = vmatpush1.bf16.msra.mxu1 %v2856_v22  ;;  %1973 = vmatprep.subr.bf16.mxu0 %v2861_v23  ;;  %v2385_v22 = vcombine.high %v3696_v20, %v3696_v20  ;;  %v2941_v23 = vld [vmem:[%s3531_s12 + $0x410] ss:$8 sps:$4 sm:$0xff]  }
  0xca   : > { %2014 = vmatprep.subr.bf16.mxu1 %v2864_v24  ;;  %v2944_v24 = vld [vmem:[%s3531_s12 + $0x510] ss:$8 sps:$4 sm:$0xff]  }
  0xcc   : > { %1974 = vmatpush1.bf16.msra.mxu0 %v2859_v25  ;;  %v2949_v25 = vld [vmem:[%s3531_s12 + $0x424] ss:$8 sps:$4 sm:$0xff]  }
  0xcd   : > { %2015 = vmatpush1.bf16.msra.mxu1 %v2862_v26  ;;  %1975 = vmatprep.subr.bf16.mxu0 %v2867_v27  ;;  %v2952_v26 = vld [vmem:[%s3531_s12 + $0x524] ss:$8 sps:$4 sm:$0xff]   ;;  %v2947_v27 = vld [vmem:[%s3531_s12 + $0x420] ss:$8 sps:$4 sm:$0xff]  }
  0xce   : > { %2016 = vmatprep.subr.bf16.mxu1 %v2870_v28  ;;  %v2950_v28 = vld [vmem:[%s3531_s12 + $0x520] ss:$8 sps:$4 sm:$0xff]  }
  0xd0   : > { %1976 = vmatpush1.bf16.msra.mxu0 %v2865_v29  ;;  %v2955_v29 = vld [vmem:[%s3531_s12 + $0x434] ss:$8 sps:$4 sm:$0xff]  }
  0xd1   : > { %2017 = vmatpush1.bf16.msra.mxu1 %v2868_v30  ;;  %1977 = vmatprep.subr.bf16.mxu0 %v2873_v31  ;;  %v2958_v30 = vld [vmem:[%s3531_s12 + $0x534] ss:$8 sps:$4 sm:$0xff]   ;;  %v2953_v31 = vld [vmem:[%s3531_s12 + $0x430] ss:$8 sps:$4 sm:$0xff]  }
  0xd2   : > { %2018 = vmatprep.subr.bf16.mxu1 %v2876_v32  ;;  %v2956_v32 = vld [vmem:[%s3531_s12 + $0x530] ss:$8 sps:$4 sm:$0xff]  }
  0xd4   : > { %1978 = vmatpush1.bf16.msra.mxu0 %v2871_v35  ;;  %v2959_v35 = vld [vmem:[%s3531_s12 + $0x440] ss:$8 sps:$4 sm:$0xff]  }
  0xd5   : > { %2019 = vmatpush1.bf16.msra.mxu1 %v2874_v36  ;;  %1979 = vmatprep.subr.bf16.mxu0 %v2879_v39  ;;  %v2962_v36 = vld [vmem:[%s3531_s12 + $0x540] ss:$8 sps:$4 sm:$0xff]   ;;  %v2965_v39 = vld [vmem:[%s3531_s12 + $0x450] ss:$8 sps:$4 sm:$0xff]  }
  0xd6   : > { %2020 = vmatprep.subr.bf16.mxu1 %v2882_v40  ;;  %v2968_v40 = vld [vmem:[%s3531_s12 + $0x550] ss:$8 sps:$4 sm:$0xff]  }
  0xd8   : > { %1980 = vmatpush1.bf16.msra.mxu0 %v2877_v41  ;;  %v2973_v41 = vld [vmem:[%s3531_s12 + $0x464] ss:$8 sps:$4 sm:$0xff]  }
  0xd9   : > { %2021 = vmatpush1.bf16.msra.mxu1 %v2880_v42  ;;  %1981 = vmatprep.subr.bf16.mxu0 %v2885_v43  ;;  %v2976_v42 = vld [vmem:[%s3531_s12 + $0x564] ss:$8 sps:$4 sm:$0xff]   ;;  %v2971_v43 = vld [vmem:[%s3531_s12 + $0x460] ss:$8 sps:$4 sm:$0xff]  }
  0xda   : > { %2022 = vmatprep.subr.bf16.mxu1 %v2888_v44  ;;  %v2974_v44 = vld [vmem:[%s3531_s12 + $0x560] ss:$8 sps:$4 sm:$0xff]  }
  0xdc   : > { %1982 = vmatpush1.bf16.msra.mxu0 %v2883_v45  ;;  %v2979_v45 = vld [vmem:[%s3531_s12 + $0x474] ss:$8 sps:$4 sm:$0xff]  }
  0xdd   : > { %2023 = vmatpush1.bf16.msra.mxu1 %v2886_v46  ;;  %1983 = vmatprep.subr.bf16.mxu0 %v2891_v47  ;;  %v2982_v46 = vld [vmem:[%s3531_s12 + $0x574] ss:$8 sps:$4 sm:$0xff]   ;;  %v2977_v47 = vld [vmem:[%s3531_s12 + $0x470] ss:$8 sps:$4 sm:$0xff]  }
  0xde   : > { %2024 = vmatprep.subr.bf16.mxu1 %v2894_v48  ;;  %v2980_v48 = vld [vmem:[%s3531_s12 + $0x570] ss:$8 sps:$4 sm:$0xff]  }
  0xe0   : > { %1984 = vmatpush1.bf16.msra.mxu0 %v2889_v49  ;;  %v2985_v49 = vld [vmem:[%s3531_s12 + $0x484] ss:$8 sps:$4 sm:$0xff]  }
  0xe1   : > { %2025 = vmatpush1.bf16.msra.mxu1 %v2892_v50  ;;  %1985 = vmatprep.subr.bf16.mxu0 %v2897_v51  ;;  %v2988_v50 = vld [vmem:[%s3531_s12 + $0x584] ss:$8 sps:$4 sm:$0xff]   ;;  %v2983_v51 = vld [vmem:[%s3531_s12 + $0x480] ss:$8 sps:$4 sm:$0xff]  }
  0xe2   : > { %2026 = vmatprep.subr.bf16.mxu1 %v2900_v52  ;;  %v2986_v52 = vld [vmem:[%s3531_s12 + $0x580] ss:$8 sps:$4 sm:$0xff]  }
  0xe4   : > { %1986 = vmatpush1.bf16.msra.mxu0 %v2895_v53  ;;  %v2991_v53 = vld [vmem:[%s3531_s12 + $0x494] ss:$8 sps:$4 sm:$0xff]  }
  0xe5   : > { %2027 = vmatpush1.bf16.msra.mxu1 %v2898_v54  ;;  %1987 = vmatprep.subr.bf16.mxu0 %v2903_v55  ;;  %v2994_v54 = vld [vmem:[%s3531_s12 + $0x594] ss:$8 sps:$4 sm:$0xff]   ;;  %v2989_v55 = vld [vmem:[%s3531_s12 + $0x490] ss:$8 sps:$4 sm:$0xff]  }
  0xe6   : > { %2028 = vmatprep.subr.bf16.mxu1 %v2906_v56  ;;  %v2992_v56 = vld [vmem:[%s3531_s12 + $0x590] ss:$8 sps:$4 sm:$0xff]  }
  0xe8   : > { %1988 = vmatpush1.bf16.msra.mxu0 %v2901_v57  ;;  %v2997_v57 = vld [vmem:[%s3531_s12 + $0x4a4] ss:$8 sps:$4 sm:$0xff]  }
  0xe9   : > { %2029 = vmatpush1.bf16.msra.mxu1 %v2904_v58  ;;  %1989 = vmatprep.subr.bf16.mxu0 %v2909_v59  ;;  %v3000_v58 = vld [vmem:[%s3531_s12 + $0x5a4] ss:$8 sps:$4 sm:$0xff]   ;;  %v2995_v59 = vld [vmem:[%s3531_s12 + $0x4a0] ss:$8 sps:$4 sm:$0xff]  }
  0xea   : > { %2030 = vmatprep.subr.bf16.mxu1 %v2912_v60  ;;  %v2998_v60 = vld [vmem:[%s3531_s12 + $0x5a0] ss:$8 sps:$4 sm:$0xff]  }
  0xec   : > { %1990 = vmatpush1.bf16.msra.mxu0 %v2907_v61  ;;  %v3003_v61 = vld [vmem:[%s3531_s12 + $0x4b4] ss:$8 sps:$4 sm:$0xff]  }
  0xed   : > { %2031 = vmatpush1.bf16.msra.mxu1 %v2910_v62  ;;  %1991 = vmatprep.subr.bf16.mxu0 %v2915_v63  ;;  %v3006_v62 = vld [vmem:[%s3531_s12 + $0x5b4] ss:$8 sps:$4 sm:$0xff]   ;;  %v3001_v63 = vld [vmem:[%s3531_s12 + $0x4b0] ss:$8 sps:$4 sm:$0xff]  }
  0xee   : > { %2032 = vmatprep.subr.bf16.mxu1 %v2918_v0  ;;  %v3004_v0 = vld [vmem:[%s3531_s12 + $0x5b0] ss:$8 sps:$4 sm:$0xff]  }
  0xf0   : > { %1992 = vmatpush1.bf16.msra.mxu0 %v2913_v1  ;;  %v3009_v1 = vld [vmem:[%s3531_s12 + $0x4c4] ss:$8 sps:$4 sm:$0xff]  }
  0xf1   : > { %2033 = vmatpush1.bf16.msra.mxu1 %v2916_v2  ;;  %1993 = vmatprep.subr.bf16.mxu0 %v2921_v3  ;;  %v3012_v2 = vld [vmem:[%s3531_s12 + $0x5c4] ss:$8 sps:$4 sm:$0xff]   ;;  %v3007_v3 = vld [vmem:[%s3531_s12 + $0x4c0] ss:$8 sps:$4 sm:$0xff]  }
  0xf2   : > { %2034 = vmatprep.subr.bf16.mxu1 %v2924_v4  ;;  %v3010_v4 = vld [vmem:[%s3531_s12 + $0x5c0] ss:$8 sps:$4 sm:$0xff]  }
  0xf4   : > { %1994 = vmatpush1.bf16.msra.mxu0 %v2919_v5  ;;  %v3015_v5 = vld [vmem:[%s3531_s12 + $0x4d4] ss:$8 sps:$4 sm:$0xff]  }
  0xf5   : > { %2035 = vmatpush1.bf16.msra.mxu1 %v2922_v6  ;;  %1995 = vmatprep.subr.bf16.mxu0 %v2927_v7  ;;  %v3018_v6 = vld [vmem:[%s3531_s12 + $0x5d4] ss:$8 sps:$4 sm:$0xff]   ;;  %v3013_v7 = vld [vmem:[%s3531_s12 + $0x4d0] ss:$8 sps:$4 sm:$0xff]  }
  0xf6   : > { %2036 = vmatprep.subr.bf16.mxu1 %v2930_v8  ;;  %v3016_v8 = vld [vmem:[%s3531_s12 + $0x5d0] ss:$8 sps:$4 sm:$0xff]  }
  0xf8   : > { %1996 = vmatpush1.bf16.msra.mxu0 %v2925_v9  ;;  %v3021_v9 = vld [vmem:[%s3531_s12 + $0x4e4] ss:$8 sps:$4 sm:$0xff]  }
  0xf9   : > { %2037 = vmatpush1.bf16.msra.mxu1 %v2928_v10  ;;  %2047 = vmatprep.subr.bf16.mxu0 %v2937_v11  ;;  %v3024_v10 = vld [vmem:[%s3531_s12 + $0x5e4] ss:$8 sps:$4 sm:$0xff]   ;;  %v3019_v11 = vld [vmem:[%s3531_s12 + $0x4e0] ss:$8 sps:$4 sm:$0xff]  }
  0xfa   : > { %2088 = vmatprep.subr.bf16.mxu1 %v2940_v12  ;;  %v3022_v12 = vld [vmem:[%s3531_s12 + $0x5e0] ss:$8 sps:$4 sm:$0xff]  }
  0xfb   : > { %1998 = vmatmul.mubr.bf16.vlgmr.msra.gmra.mrb[4].mxu0 %v2378_v13  ;;  %v3027_v13 = vld [vmem:[%s3531_s12 + $0x4f4] ss:$8 sps:$4 sm:$0xff]  }
  0xfc   : > { %2039 = vmatmul.mubr.bf16.vlgmr.msra.gmra.mrb[4].mxu1 %v2380_v14  ;;  %2048 = vmatpush1.bf16.msra.mxu0 %v2935_v15  ;;  %v3030_v14 = vld [vmem:[%s3531_s12 + $0x5f4] ss:$8 sps:$4 sm:$0xff]   ;;  %v3025_v15 = vld [vmem:[%s3531_s12 + $0x4f0] ss:$8 sps:$4 sm:$0xff]  }
  0xfd   : > { %2089 = vmatpush1.bf16.msra.mxu1 %v2938_v16  ;;  %2049 = vmatprep.subr.bf16.mxu0 %v2943_v17  ;;  %v3028_v16 = vld [vmem:[%s3531_s12 + $0x5f0] ss:$8 sps:$4 sm:$0xff]   ;;  %v3037_v17 = vld [vmem:[%s3531_s12 + $0x604] ss:$8 sps:$4 sm:$0xff]  }
  0xfe   : > { %2090 = vmatprep.subr.bf16.mxu1 %v2946_v18  ;;  %2079 = vmatprep.mubr.bf16.mxu0 %v2383_v21  ;;  %v3040_v18 = vld [vmem:[%s3531_s12 + $0x704] ss:$8 sps:$4 sm:$0xff]   ;;  %v2382_v21 = vcombine.low %v3693_v19, %v3693_v19 }
  0xff   : > { %2120 = vmatprep.mubr.bf16.mxu1 %v2385_v22  ;;  %v2384_v22 = vcombine.low %v3696_v20, %v3696_v20 }
 0x100   : > { %2050 = vmatpush1.bf16.msra.mxu0 %v2941_v23  ;;  %v3767_v23 = vld [vmem:[%s3524_s30 + $0x30] sm:$0xff] }
 0x101   : > { %2091 = vmatpush1.bf16.msra.mxu1 %v2944_v24  ;;  %2051 = vmatprep.subr.bf16.mxu0 %v2949_v25  ;;  %v3770_v24 = vld [vmem:[%s3524_s30 + $0x38] sm:$0xff]  ;;  %v3035_v25 = vld [vmem:[%s3531_s12 + $0x600] ss:$8 sps:$4 sm:$0xff]   ;;  %v2387_v19 = vcombine.high %v3767_v23, %v3767_v23 }
 0x102   : > { %2092 = vmatprep.subr.bf16.mxu1 %v2952_v26  ;;  %v3038_v26 = vld [vmem:[%s3531_s12 + $0x700] ss:$8 sps:$4 sm:$0xff]   ;;  %v2389_v20 = vcombine.high %v3770_v24, %v3770_v24 }
 0x104   : > { %2052 = vmatpush1.bf16.msra.mxu0 %v2947_v27  ;;  %v3043_v27 = vld [vmem:[%s3531_s12 + $0x614] ss:$8 sps:$4 sm:$0xff]  }
 0x105   : > { %2093 = vmatpush1.bf16.msra.mxu1 %v2950_v28  ;;  %2053 = vmatprep.subr.bf16.mxu0 %v2955_v29  ;;  %v3046_v28 = vld [vmem:[%s3531_s12 + $0x714] ss:$8 sps:$4 sm:$0xff]   ;;  %v3041_v29 = vld [vmem:[%s3531_s12 + $0x610] ss:$8 sps:$4 sm:$0xff]  }
 0x106   : > { %2094 = vmatprep.subr.bf16.mxu1 %v2958_v30  ;;  %v3044_v30 = vld [vmem:[%s3531_s12 + $0x710] ss:$8 sps:$4 sm:$0xff]  }
 0x108   : > { %2054 = vmatpush1.bf16.msra.mxu0 %v2953_v31  ;;  %v3049_v31 = vld [vmem:[%s3531_s12 + $0x624] ss:$8 sps:$4 sm:$0xff]  }
 0x109   : > { %2095 = vmatpush1.bf16.msra.mxu1 %v2956_v32  ;;  %2055 = vmatprep.subr.bf16.mxu0 %v2961_v33  ;;  %v3052_v32 = vld [vmem:[%s3531_s12 + $0x724] ss:$8 sps:$4 sm:$0xff]   ;;  %v3047_v33 = vld [vmem:[%s3531_s12 + $0x620] ss:$8 sps:$4 sm:$0xff]  }
 0x10a   : > { %2096 = vmatprep.subr.bf16.mxu1 %v2964_v34  ;;  %v3050_v34 = vld [vmem:[%s3531_s12 + $0x720] ss:$8 sps:$4 sm:$0xff]  }
 0x10c   : > { %2056 = vmatpush1.bf16.msra.mxu0 %v2959_v35  ;;  %v3055_v35 = vld [vmem:[%s3531_s12 + $0x634] ss:$8 sps:$4 sm:$0xff]  }
 0x10d   : > { %2097 = vmatpush1.bf16.msra.mxu1 %v2962_v36  ;;  %2057 = vmatprep.subr.bf16.mxu0 %v2967_v37  ;;  %v3058_v36 = vld [vmem:[%s3531_s12 + $0x734] ss:$8 sps:$4 sm:$0xff]   ;;  %v3053_v37 = vld [vmem:[%s3531_s12 + $0x630] ss:$8 sps:$4 sm:$0xff]  }
 0x10e   : > { %2098 = vmatprep.subr.bf16.mxu1 %v2970_v38  ;;  %v3056_v38 = vld [vmem:[%s3531_s12 + $0x730] ss:$8 sps:$4 sm:$0xff]  }
 0x110   : > { %2058 = vmatpush1.bf16.msra.mxu0 %v2965_v39  ;;  %v3061_v39 = vld [vmem:[%s3531_s12 + $0x644] ss:$8 sps:$4 sm:$0xff]  }
 0x111   : > { %2099 = vmatpush1.bf16.msra.mxu1 %v2968_v40  ;;  %2059 = vmatprep.subr.bf16.mxu0 %v2973_v41  ;;  %v3064_v40 = vld [vmem:[%s3531_s12 + $0x744] ss:$8 sps:$4 sm:$0xff]   ;;  %v3059_v41 = vld [vmem:[%s3531_s12 + $0x640] ss:$8 sps:$4 sm:$0xff]  }
 0x112   : > { %2100 = vmatprep.subr.bf16.mxu1 %v2976_v42  ;;  %v3062_v42 = vld [vmem:[%s3531_s12 + $0x740] ss:$8 sps:$4 sm:$0xff]  }
 0x114   : > { %2060 = vmatpush1.bf16.msra.mxu0 %v2971_v43  ;;  %v3067_v43 = vld [vmem:[%s3531_s12 + $0x654] ss:$8 sps:$4 sm:$0xff]  }
 0x115   : > { %2101 = vmatpush1.bf16.msra.mxu1 %v2974_v44  ;;  %2061 = vmatprep.subr.bf16.mxu0 %v2979_v45  ;;  %v3070_v44 = vld [vmem:[%s3531_s12 + $0x754] ss:$8 sps:$4 sm:$0xff]   ;;  %v3065_v45 = vld [vmem:[%s3531_s12 + $0x650] ss:$8 sps:$4 sm:$0xff]  }
 0x116   : > { %2102 = vmatprep.subr.bf16.mxu1 %v2982_v46  ;;  %v3068_v46 = vld [vmem:[%s3531_s12 + $0x750] ss:$8 sps:$4 sm:$0xff]  }
 0x118   : > { %2062 = vmatpush1.bf16.msra.mxu0 %v2977_v47  ;;  %v3073_v47 = vld [vmem:[%s3531_s12 + $0x664] ss:$8 sps:$4 sm:$0xff]  }
 0x119   : > { %2103 = vmatpush1.bf16.msra.mxu1 %v2980_v48  ;;  %2063 = vmatprep.subr.bf16.mxu0 %v2985_v49  ;;  %v3076_v48 = vld [vmem:[%s3531_s12 + $0x764] ss:$8 sps:$4 sm:$0xff]   ;;  %v3071_v49 = vld [vmem:[%s3531_s12 + $0x660] ss:$8 sps:$4 sm:$0xff]  }
 0x11a   : > { %2104 = vmatprep.subr.bf16.mxu1 %v2988_v50  ;;  %v3074_v50 = vld [vmem:[%s3531_s12 + $0x760] ss:$8 sps:$4 sm:$0xff]  }
 0x11c   : > { %2064 = vmatpush1.bf16.msra.mxu0 %v2983_v51  ;;  %v3079_v51 = vld [vmem:[%s3531_s12 + $0x674] ss:$8 sps:$4 sm:$0xff]  }
 0x11d   : > { %2105 = vmatpush1.bf16.msra.mxu1 %v2986_v52  ;;  %2065 = vmatprep.subr.bf16.mxu0 %v2991_v53  ;;  %v3082_v52 = vld [vmem:[%s3531_s12 + $0x774] ss:$8 sps:$4 sm:$0xff]   ;;  %v3077_v53 = vld [vmem:[%s3531_s12 + $0x670] ss:$8 sps:$4 sm:$0xff]  }
 0x11e   : > { %2106 = vmatprep.subr.bf16.mxu1 %v2994_v54  ;;  %v3080_v54 = vld [vmem:[%s3531_s12 + $0x770] ss:$8 sps:$4 sm:$0xff]  }
 0x120   : > { %2066 = vmatpush1.bf16.msra.mxu0 %v2989_v55  ;;  %v3085_v55 = vld [vmem:[%s3531_s12 + $0x684] ss:$8 sps:$4 sm:$0xff]  }
 0x121   : > { %2107 = vmatpush1.bf16.msra.mxu1 %v2992_v56  ;;  %2067 = vmatprep.subr.bf16.mxu0 %v2997_v57  ;;  %v3088_v56 = vld [vmem:[%s3531_s12 + $0x784] ss:$8 sps:$4 sm:$0xff]   ;;  %v3083_v57 = vld [vmem:[%s3531_s12 + $0x680] ss:$8 sps:$4 sm:$0xff]  }
 0x122   : > { %2108 = vmatprep.subr.bf16.mxu1 %v3000_v58  ;;  %v3086_v58 = vld [vmem:[%s3531_s12 + $0x780] ss:$8 sps:$4 sm:$0xff]  }
 0x124   : > { %2068 = vmatpush1.bf16.msra.mxu0 %v2995_v59  ;;  %v3091_v59 = vld [vmem:[%s3531_s12 + $0x694] ss:$8 sps:$4 sm:$0xff]  }
 0x125   : > { %2109 = vmatpush1.bf16.msra.mxu1 %v2998_v60  ;;  %2069 = vmatprep.subr.bf16.mxu0 %v3003_v61  ;;  %v3094_v60 = vld [vmem:[%s3531_s12 + $0x794] ss:$8 sps:$4 sm:$0xff]   ;;  %v3089_v61 = vld [vmem:[%s3531_s12 + $0x690] ss:$8 sps:$4 sm:$0xff]  }
 0x126   : > { %2110 = vmatprep.subr.bf16.mxu1 %v3006_v62  ;;  %v3092_v62 = vld [vmem:[%s3531_s12 + $0x790] ss:$8 sps:$4 sm:$0xff]  }
 0x128   : > { %2070 = vmatpush1.bf16.msra.mxu0 %v3001_v63  ;;  %v3097_v63 = vld [vmem:[%s3531_s12 + $0x6a4] ss:$8 sps:$4 sm:$0xff]  }
 0x129   : > { %2111 = vmatpush1.bf16.msra.mxu1 %v3004_v0  ;;  %2071 = vmatprep.subr.bf16.mxu0 %v3009_v1  ;;  %v3100_v0 = vld [vmem:[%s3531_s12 + $0x7a4] ss:$8 sps:$4 sm:$0xff]   ;;  %v3095_v1 = vld [vmem:[%s3531_s12 + $0x6a0] ss:$8 sps:$4 sm:$0xff]  }
 0x12a   : > { %2112 = vmatprep.subr.bf16.mxu1 %v3012_v2  ;;  %v3098_v2 = vld [vmem:[%s3531_s12 + $0x7a0] ss:$8 sps:$4 sm:$0xff]  }
 0x12c   : > { %2072 = vmatpush1.bf16.msra.mxu0 %v3007_v3  ;;  %v3103_v3 = vld [vmem:[%s3531_s12 + $0x6b4] ss:$8 sps:$4 sm:$0xff]  }
 0x12d   : > { %2113 = vmatpush1.bf16.msra.mxu1 %v3010_v4  ;;  %2073 = vmatprep.subr.bf16.mxu0 %v3015_v5  ;;  %v3106_v4 = vld [vmem:[%s3531_s12 + $0x7b4] ss:$8 sps:$4 sm:$0xff]   ;;  %v3101_v5 = vld [vmem:[%s3531_s12 + $0x6b0] ss:$8 sps:$4 sm:$0xff]  }
 0x12e   : > { %2114 = vmatprep.subr.bf16.mxu1 %v3018_v6  ;;  %v3104_v6 = vld [vmem:[%s3531_s12 + $0x7b0] ss:$8 sps:$4 sm:$0xff]  }
 0x130   : > { %2074 = vmatpush1.bf16.msra.mxu0 %v3013_v7  ;;  %v3109_v7 = vld [vmem:[%s3531_s12 + $0x6c4] ss:$8 sps:$4 sm:$0xff]  }
 0x131   : > { %2115 = vmatpush1.bf16.msra.mxu1 %v3016_v8  ;;  %2075 = vmatprep.subr.bf16.mxu0 %v3021_v9  ;;  %v3112_v8 = vld [vmem:[%s3531_s12 + $0x7c4] ss:$8 sps:$4 sm:$0xff]   ;;  %v3107_v9 = vld [vmem:[%s3531_s12 + $0x6c0] ss:$8 sps:$4 sm:$0xff]  }
 0x132   : > { %2116 = vmatprep.subr.bf16.mxu1 %v3024_v10  ;;  %v3110_v10 = vld [vmem:[%s3531_s12 + $0x7c0] ss:$8 sps:$4 sm:$0xff]  }
 0x134   : > { %2076 = vmatpush1.bf16.msra.mxu0 %v3019_v11  ;;  %v3115_v11 = vld [vmem:[%s3531_s12 + $0x6d4] ss:$8 sps:$4 sm:$0xff]  }
 0x135   : > { %2117 = vmatpush1.bf16.msra.mxu1 %v3022_v12  ;;  %2077 = vmatprep.subr.bf16.mxu0 %v3027_v13  ;;  %v3118_v12 = vld [vmem:[%s3531_s12 + $0x7d4] ss:$8 sps:$4 sm:$0xff]   ;;  %v3113_v13 = vld [vmem:[%s3531_s12 + $0x6d0] ss:$8 sps:$4 sm:$0xff]  }
 0x136   : > { %2118 = vmatprep.subr.bf16.mxu1 %v3030_v14  ;;  %v3116_v14 = vld [vmem:[%s3531_s12 + $0x7d0] ss:$8 sps:$4 sm:$0xff]  }
 0x138   : > { %2078 = vmatpush1.bf16.msra.mxu0 %v3025_v15  ;;  %v3121_v15 = vld [vmem:[%s3531_s12 + $0x6e4] ss:$8 sps:$4 sm:$0xff]  }
 0x139   : > { %2119 = vmatpush1.bf16.msra.mxu1 %v3028_v16  ;;  %2129 = vmatprep.subr.bf16.mxu0 %v3037_v17  ;;  %v3124_v16 = vld [vmem:[%s3531_s12 + $0x7e4] ss:$8 sps:$4 sm:$0xff]   ;;  %v3119_v17 = vld [vmem:[%s3531_s12 + $0x6e0] ss:$8 sps:$4 sm:$0xff]  }
 0x13a   : > { %2170 = vmatprep.subr.bf16.mxu1 %v3040_v18  ;;  %v3122_v18 = vld [vmem:[%s3531_s12 + $0x7e0] ss:$8 sps:$4 sm:$0xff]  }
 0x13b   : > { %2080 = vmatmul.mubr.bf16.vlgmr.msra.gmra.mrb[8].mxu0 %v2382_v21  ;;  %v3127_v21 = vld [vmem:[%s3531_s12 + $0x6f4] ss:$8 sps:$4 sm:$0xff]  }
 0x13c   : > { %2121 = vmatmul.mubr.bf16.vlgmr.msra.gmra.mrb[8].mxu1 %v2384_v22  ;;  %2130 = vmatpush1.bf16.msra.mxu0 %v3035_v25  ;;  %v3130_v22 = vld [vmem:[%s3531_s12 + $0x7f4] ss:$8 sps:$4 sm:$0xff]   ;;  %v3125_v25 = vld [vmem:[%s3531_s12 + $0x6f0] ss:$8 sps:$4 sm:$0xff]  }
 0x13d   : > { %2171 = vmatpush1.bf16.msra.mxu1 %v3038_v26  ;;  %2131 = vmatprep.subr.bf16.mxu0 %v3043_v27  ;;  %v3128_v26 = vld [vmem:[%s3531_s12 + $0x7f0] ss:$8 sps:$4 sm:$0xff]   ;;  %v2386_v27 = vcombine.low %v3767_v23, %v3767_v23 }
 0x13e   : > { %2172 = vmatprep.subr.bf16.mxu1 %v3046_v28  ;;  %2161 = vmatprep.mubr.bf16.mxu0 %v2387_v19  ;;  %v2388_v28 = vcombine.low %v3770_v24, %v3770_v24 }
 0x13f   : > { %2202 = vmatprep.mubr.bf16.mxu1 %v2389_v20 }
 0x140   : > { %2132 = vmatpush1.bf16.msra.mxu0 %v3041_v29 }
 0x141   : > { %2173 = vmatpush1.bf16.msra.mxu1 %v3044_v30  ;;  %2133 = vmatprep.subr.bf16.mxu0 %v3049_v31 }
 0x142   : > { %2174 = vmatprep.subr.bf16.mxu1 %v3052_v32 }
 0x144   : > { %2134 = vmatpush1.bf16.msra.mxu0 %v3047_v33 }
 0x145   : > { %2175 = vmatpush1.bf16.msra.mxu1 %v3050_v34  ;;  %2135 = vmatprep.subr.bf16.mxu0 %v3055_v35 }
 0x146   : > { %2176 = vmatprep.subr.bf16.mxu1 %v3058_v36 }
 0x148   : > { %2136 = vmatpush1.bf16.msra.mxu0 %v3053_v37 }
 0x149   : > { %2177 = vmatpush1.bf16.msra.mxu1 %v3056_v38  ;;  %2137 = vmatprep.subr.bf16.mxu0 %v3061_v39 }
 0x14a   : > { %2178 = vmatprep.subr.bf16.mxu1 %v3064_v40 }
 0x14c   : > { %2138 = vmatpush1.bf16.msra.mxu0 %v3059_v41 }
 0x14d   : > { %2179 = vmatpush1.bf16.msra.mxu1 %v3062_v42  ;;  %2139 = vmatprep.subr.bf16.mxu0 %v3067_v43 }
 0x14e   : > { %2180 = vmatprep.subr.bf16.mxu1 %v3070_v44 }
 0x150   : > { %2140 = vmatpush1.bf16.msra.mxu0 %v3065_v45 }
 0x151   : > { %2181 = vmatpush1.bf16.msra.mxu1 %v3068_v46  ;;  %2141 = vmatprep.subr.bf16.mxu0 %v3073_v47 }
 0x152   : > { %2182 = vmatprep.subr.bf16.mxu1 %v3076_v48 }
 0x154   : > { %2142 = vmatpush1.bf16.msra.mxu0 %v3071_v49 }
 0x155   : > { %2183 = vmatpush1.bf16.msra.mxu1 %v3074_v50  ;;  %2143 = vmatprep.subr.bf16.mxu0 %v3079_v51 }
 0x156   : > { %2184 = vmatprep.subr.bf16.mxu1 %v3082_v52 }
 0x158   : > { %2144 = vmatpush1.bf16.msra.mxu0 %v3077_v53 }
 0x159   : > { %2185 = vmatpush1.bf16.msra.mxu1 %v3080_v54  ;;  %2145 = vmatprep.subr.bf16.mxu0 %v3085_v55 }
 0x15a   : > { %2186 = vmatprep.subr.bf16.mxu1 %v3088_v56 }
 0x15c   : > { %2146 = vmatpush1.bf16.msra.mxu0 %v3083_v57 }
 0x15d   : > { %2187 = vmatpush1.bf16.msra.mxu1 %v3086_v58  ;;  %2147 = vmatprep.subr.bf16.mxu0 %v3091_v59 }
 0x15e   : > { %2188 = vmatprep.subr.bf16.mxu1 %v3094_v60 }
 0x160   : > { %2148 = vmatpush1.bf16.msra.mxu0 %v3089_v61 }
 0x161   : > { %2189 = vmatpush1.bf16.msra.mxu1 %v3092_v62  ;;  %2149 = vmatprep.subr.bf16.mxu0 %v3097_v63 }
 0x162   : > { %2190 = vmatprep.subr.bf16.mxu1 %v3100_v0  ;;  %v281_v0 = vld [vmem:[#allocation2] sm:$0xff] }
 0x164   : > { %2150 = vmatpush1.bf16.msra.mxu0 %v3095_v1 }
 0x165   : > { %2191 = vmatpush1.bf16.msra.mxu1 %v3098_v2  ;;  %2151 = vmatprep.subr.bf16.mxu0 %v3103_v3 }
 0x166   : > { %2192 = vmatprep.subr.bf16.mxu1 %v3106_v4 }
 0x168   : > { %2152 = vmatpush1.bf16.msra.mxu0 %v3101_v5  ;;  %v282_v5 = vld [vmem:[#allocation2 + $0x8] sm:$0xff] }
 0x169   : > { %2193 = vmatpush1.bf16.msra.mxu1 %v3104_v6  ;;  %2153 = vmatprep.subr.bf16.mxu0 %v3109_v7 }
 0x16a   : > { %2194 = vmatprep.subr.bf16.mxu1 %v3112_v8 }
 0x16c   : > { %2154 = vmatpush1.bf16.msra.mxu0 %v3107_v9 }
 0x16d   : > { %2195 = vmatpush1.bf16.msra.mxu1 %v3110_v10  ;;  %2155 = vmatprep.subr.bf16.mxu0 %v3115_v11  ;;  %v2223_v11 = vlaneseq (!%p2646_p9) }
 0x16e   : > { %2196 = vmatprep.subr.bf16.mxu1 %v3118_v12 }
 0x16f   : > { %v2224_v12 = vshrl.u32 (!%p2646_p9), %v2223_v11, 7 }
 0x170   : > { %2156 = vmatpush1.bf16.msra.mxu0 %v3113_v13  ;;  %v2221_v13 = vld [vmem:[#allocation8] sm:$0x3] (!%p2646_p9) }
 0x171   : > { %2197 = vmatpush1.bf16.msra.mxu1 %v3116_v14  ;;  %2157 = vmatprep.subr.bf16.mxu0 %v3121_v15  ;;  %v2225_v14 = vsub.s32 (!%p2646_p9), 0, %v2224_v12  ;;  %v2229_v15 = vsub.s32 (!%p2646_p9), 1, %v2224_v12 }
 0x172   : > { %2198 = vmatprep.subr.bf16.mxu1 %v3124_v16 }
 0x174   : > { %2158 = vmatpush1.bf16.msra.mxu0 %v3119_v17 }
 0x175   : > { %2199 = vmatpush1.bf16.msra.mxu1 %v3122_v18  ;;  %2159 = vmatprep.subr.bf16.mxu0 %v3127_v21  ;;  %v2226_v18 = vrot.slane (!%p2646_p9), %v2221_v13, %v2225_v14  ;;  %v2230_v21 = vrot.slane (!%p2646_p9), %v2221_v13, %v2229_v15 }
 0x176   : > { %2200 = vmatprep.subr.bf16.mxu1 %v3130_v22 }
 0x178   : > { %2160 = vmatpush1.bf16.msra.mxu0 %v3125_v25 }
 0x179   : > { %2201 = vmatpush1.bf16.msra.mxu1 %v3128_v26 }
 0x17b   : > { %2162 = vmatmul.mubr.bf16.vlgmr.msra.gmra.mrb[12].mxu0 %v2386_v27 }
 0x17c   : > { %2203 = vmatmul.mubr.bf16.vlgmr.msra.gmra.mrb[12].mxu1 %v2388_v28 }
 0x18e   : > { %v1917_v19 = vpop.f32.mrb[0].mxu0 }
 0x18f   : > { %v1958_v20 = vpop.f32.mrb[0].mxu1  ;;  %v1919_v30 = vpop.f32.mrb[1].mxu0 }
 0x190   : > { %v1959_v29 = vadd.f32 %v1958_v20, %v1917_v19  ;;  %v1960_v31 = vpop.f32.mrb[1].mxu1  ;;  %v1921_v33 = vpop.f32.mrb[2].mxu0 }
 0x191   : > { %v1961_v32 = vadd.f32 %v1960_v31, %v1919_v30  ;;  %v1962_v34 = vpop.f32.mrb[2].mxu1  ;;  %v1922_v35 = vpop.f32.mrb[3].mxu0 }
 0x192   : > { %v1963_v36 = vpop.f32.mrb[3].mxu1 }
 0x1ce   : > { %v1999_v37 = vpop.f32.mrb[4].mxu0 }
 0x1cf   : > { %v2040_v38 = vpop.f32.mrb[4].mxu1  ;;  %v2000_v23 = vadd.f32 %v1999_v37, %v1959_v29  ;;  %v2001_v39 = vpop.f32.mrb[5].mxu0 }
 0x1d0   : > { %v2042_v40 = vpop.f32.mrb[5].mxu1  ;;  %v2002_v24 = vadd.f32 %v2001_v39, %v1961_v32  ;;  %v2003_v41 = vpop.f32.mrb[6].mxu0 }
 0x1d1   : > { %v2044_v42 = vpop.f32.mrb[6].mxu1  ;;  %v2041_v43 = vadd.f32 %v2040_v38, %v2000_v23  ;;  %v2004_v44 = vpop.f32.mrb[7].mxu0 }
 0x1d2   : > { %v2045_v45 = vpop.f32.mrb[7].mxu1  ;;  %v2043_v46 = vadd.f32 %v2042_v40, %v2002_v24 }
 0x20e   : > { %v2081_v47 = vpop.f32.mrb[8].mxu0 }
 0x20f   : > { %v2122_v48 = vpop.f32.mrb[8].mxu1  ;;  %v2082_v49 = vadd.f32 %v2081_v47, %v2041_v43  ;;  %v2083_v50 = vpop.f32.mrb[9].mxu0 }
 0x210   : > { %v2124_v51 = vpop.f32.mrb[9].mxu1  ;;  %v2084_v52 = vadd.f32 %v2083_v50, %v2043_v46  ;;  %v2085_v53 = vpop.f32.mrb[10].mxu0 }
 0x211   : > { %v2126_v54 = vpop.f32.mrb[10].mxu1  ;;  %v2123_v55 = vadd.f32 %v2122_v48, %v2082_v49  ;;  %v2086_v56 = vpop.f32.mrb[11].mxu0 }
 0x212   : > { %v2127_v57 = vpop.f32.mrb[11].mxu1  ;;  %v2125_v58 = vadd.f32 %v2124_v51, %v2084_v52 }
 0x24e   : > { %v2163_v59 = vpop.f32.mrb[12].mxu0 }
 0x24f   : > { %v2204_v60 = vpop.f32.mrb[12].mxu1  ;;  %v2164_v61 = vadd.f32 %v2163_v59, %v2123_v55  ;;  %v2165_v62 = vpop.f32.mrb[13].mxu0 }
 0x250   : > { %v2206_v63 = vpop.f32.mrb[13].mxu1  ;;  %v2166_v1 = vadd.f32 %v2165_v62, %v2125_v58  ;;  %v2167_v2 = vpop.f32.mrb[14].mxu0  ;;  %2218 = sbr.rel (%p2646_p9) target bundleno = 611 (0x263), region = 52 }
 0x251   : > { %v2208_v3 = vpop.f32.mrb[14].mxu1  ;;  %v2205_v4 = vadd.f32 %v2204_v60, %v2164_v61  ;;  %v2168_v6 = vpop.f32.mrb[15].mxu0 }
 0x252   : > { %v2209_v7 = vpop.f32.mrb[15].mxu1  ;;  %v2207_v8 = vadd.f32 %v2206_v63, %v2166_v1 }
 0x253   : > { %v2211_v9 = vadd.f32 %v2205_v4, %v281_v0 }
 0x254   : > { %v2212_v10 = vadd.f32 %v2207_v8, %v282_v5 }
 0x255   : > { %2213 = vst [vmem:[#allocation2] sm:$0xff] %v2211_v9 }
 0x256   : > { %2214 = vst [vmem:[#allocation2 + $0x8] sm:$0xff] %v2212_v10 }
 0x25c   : > { %v2219_v16 = vld [vmem:[#allocation2] sm:$0xff] }
 0x25d   : > { %v2220_v17 = vld [vmem:[#allocation2 + $0x8] sm:$0xff]  ;;  %v2233_v22 = vadd.f32 %v2226_v18, %v2219_v16 }
 0x25e   : > { %v2234_v25 = vadd.f32 %v2230_v21, %v2220_v17 }
 0x25f   : > { %v2235_v26 = vmax.f32 %v2233_v22, 0.0 }
 0x260   : > { %v2236_v27 = vmax.f32 %v2234_v25, 0.0 }
 0x261   : > { %2237 = vst [vmem:[#allocation9] sm:$0xff] %v2235_v26 }
 0x262   : > { %2238 = vst [vmem:[#allocation9 + $0x8] sm:$0xff] %v2236_v27 }
 0x263 PF: > { %p2680_p11 = scmp.eq.s32.totalorder %s3369_s18, 1  ;;  %s3319_s15 = smov [#allocation9]  }
 0x264   : > { %s2251_s20 = sshll.u32 %s3319_s15, 4  ;;  %s2252_s20 = int_to_ptr.vmem [resolvable:$true] %s2251_s20 }
 0x265   : > { %s3223_s21 = scalar_lea.vmem %s2252_s20, 256  ;;  %p3230_p1 = scmp.lt.s32.totalorder %s2252_s20, %s2252_s20 }
 0x266   : > { %p3224_p13 = scmp.ne.s32.totalorder %s2252_s20, %s3223_s21  ;;  %p3231_p0 = scmp.lt.s32.totalorder %s3223_s21, %s3223_s21 }
 0x268   : > { %p3225_p3 = pnand %p3224_p13, %p2680_p11  ;;  %p3232_p8 = por %p3231_p0, %p3230_p1 }
 0x26a   : > { %p3226_p4 = pneg %p3225_p3 }
 0x26c   : > { %p3233_p2 = pnand %p3232_p8, %p3226_p4 }
 0x26e   : > { %3236 = shalt.err (!%p3233_p2)
}
 0x26f   : > { %s3237_s7 = scalar_lea.hbm %s3887_s3, 256 }
 0x270   : > { %p3238_p12 = scmp.ne.s32.totalorder %s3887_s3, %s3237_s7  ;;  %p3243_p5 = scmp.lt.u32.totalorder %s3237_s7, %s3887_s3 }
 0x272   : > { %p3239_p7 = pnand %p3238_p12, %p2680_p11 }
 0x274   : > { %p3240_p10 = pneg %p3239_p7 }
 0x276   : > { %p3245_p6 = pnand %p3243_p5, %p3240_p10 }
 0x278   : > { %3248 = shalt.err (!%p3245_p6)
}
 0x279   : > { %2663 = dma.vmem_to_hbm [thread:$0]  (%p2680_p11), %s2252_s20, 256, %s3887_s3, [#allocation5]  }
 0x27a   : > { %3286 = dma.done.wait (%p2680_p11), [#allocation5], 256  }
 0x27b   : > { %3288 = vsyncadd (%p2680_p11), [#allocation5], 4294967040 }
 0x27c PF: > { %s20_s17 = sadd.s32 1, %s3311_s17   ;;  %s3904_s12 = smov %s3295_s13 }
 0x27d   : > { %p17_p9 = scmp.ge.s32.totalorder %s20_s17, 4   ;;  %s3905_s13 = smov %s3299_s14 }
 0x27e   : > { %s3906_s14 = smov %s3445_s23  ;;  %s3907_s15 = smov %s3307_s16 }
 0x27f   : > { %s3908_s16 = smov %s3910_s25  ;;  %19 = sbr.rel (!%p17_p9) target bundleno = 7 (0x7), region = 96 }
 0x286   :  { %2264 = vsyncpa [#allocation4], 1 }
 0x287   :  { %2266 = vsyncpa [#allocation4 + $0x1], 1 }
 0x288   :  { %2267 = vsyncpa [#allocation7], 1 }
 0x289   :  { %2269 = vsyncpa [#allocation7 + $0x1], 1 }
 0x28a   :  { %2270 = vsyncpa [#allocation5], 1 }
 0x28b   :  { %2272 = vsyncpa [#allocation5 + $0x1], 1 }

</bundles_post_ra>
